<compile_context>
chip_gen: v7x
topology: tpu7x:2x2x1
jax: 0.10.0
libtpu: 0.0.40
codegen_flags: <defaults>
</compile_context>

<pallas_src>
from functools import partial

import jax
import jax.numpy as jnp
from jax.experimental import pallas as pl
from jax.experimental.pallas import tpu as pltpu


# ------------------------------ Pallas kernel -------------------------------
def _attention_kernel(xt_ref, wqkv_ref, bqkv_ref, wproj_ref, bproj_ref, mask_ref,
                      o_ref, *, num_heads, scale):
    # Transposed, lane-dense layout: features on sublanes, tokens on lanes.
    x_t = xt_ref[...]                                   # (C, T) f32
    C, T = x_t.shape
    hd = C // num_heads

    # Fused QKV projection for all tokens of all batch elements:
    # qkv^T = Wqkv @ x^T + b  -> (3C, T), one MXU matmul.
    qkv_t = jnp.dot(wqkv_ref[...].astype(jnp.bfloat16), x_t.astype(jnp.bfloat16),
                    preferred_element_type=jnp.float32) + bqkv_ref[...]

    mask = mask_ref[...]                                # (T, T) block-diagonal additive mask

    # Per-head attention (static unroll, num_heads is small).  All qkv slices are
    # sublane-aligned row slices (hd = 8 rows each) -> free views, no lane shuffles.
    ctx_blocks = []
    for h in range(num_heads):
        lo = h * hd
        q_t = qkv_t[lo:lo + hd, :]                      # (hd, T)
        k_t = qkv_t[C + lo:C + lo + hd, :]              # (hd, T)
        v_t = qkv_t[2 * C + lo:2 * C + lo + hd, :]      # (hd, T)

        # s[i, j] = sum_d q[i, d] * k[j, d].  One small (hd,T)->(T,hd) transpose per
        # head puts the contraction dim on lanes for the streamed MXU operand.
        q_tok = q_t.T                                   # (T, hd)
        s = jnp.dot(q_tok.astype(jnp.bfloat16), k_t.astype(jnp.bfloat16),
                    preferred_element_type=jnp.float32) * scale + mask   # (T, T)

        # Row-wise softmax in f32; masked logits underflow to exactly 0 probability.
        s = s - jnp.max(s, axis=-1, keepdims=True)
        p = jnp.exp(s)
        p = p / jnp.sum(p, axis=-1, keepdims=True)

        # ctx^T[d, i] = sum_j v^T[d, j] * p[i, j]: contract last dims of both
        # (native MXU transpose_rhs form, no materialized transpose).
        ctx_t = jax.lax.dot_general(
            v_t.astype(jnp.bfloat16), p.astype(jnp.bfloat16),
            dimension_numbers=(((1,), (1,)), ((), ())),
            preferred_element_type=jnp.float32)         # (hd, T)
        ctx_blocks.append(ctx_t)

    # Stack heads along sublanes (tile-aligned) and run one projection matmul.
    ctx_t = jnp.concatenate(ctx_blocks, axis=0)         # (C, T)
    out_t = jnp.dot(wproj_ref[...].astype(jnp.bfloat16), ctx_t.astype(jnp.bfloat16),
                    preferred_element_type=jnp.float32) + bproj_ref[...]
    o_ref[...] = out_t.astype(o_ref.dtype)              # (C, T): lane-dense store


# --------------------------------- wrapper ----------------------------------
def attention_forward(x, wqkv, bqkv, wproj, bproj, *, series_len, num_heads):
    """x: (B, L, C).  Weights in PyTorch layout: wqkv (3C, C), wproj (C, C)."""
    B, L, C = x.shape
    assert L % series_len == 0 and C % num_heads == 0
    N = L // series_len                    # tokens per attention group
    T = B * L                              # batch folded into the token axis
    hd = C // num_heads
    scale = hd ** -0.5

    # Lane-dense transposed activations: tokens on the 128-lane axis.
    x_t = x.reshape(T, C).T                                        # (C, T)

    # Static block-diagonal mask: tokens attend only within their own series group.
    grp = jnp.arange(T, dtype=jnp.int32) // N
    mask = jnp.where(grp[:, None] == grp[None, :], 0.0, -1e30).astype(jnp.float32)

    bqkv_c = bqkv.reshape(3 * C, 1).astype(jnp.float32)
    bproj_c = bproj.reshape(C, 1).astype(jnp.float32)

    flops = 2 * T * (3 * C) * C + num_heads * 4 * hd * T * T + 2 * T * C * C
    bytes_accessed = 4 * (2 * C * T + 3 * C * C + 3 * C + C * C + C + T * T)
    cost = pl.CostEstimate(flops=flops, transcendentals=num_heads * T * T,
                           bytes_accessed=bytes_accessed)

    kernel = partial(_attention_kernel, num_heads=num_heads, scale=scale)
    out_t = pl.pallas_call(
        kernel,
        out_shape=jax.ShapeDtypeStruct((C, T), jnp.float32),
        grid=(1,),                                      # single fused step
        in_specs=[
            pl.BlockSpec((C, T), lambda i: (0, 0)),
            pl.BlockSpec((3 * C, C), lambda i: (0, 0)),
            pl.BlockSpec((3 * C, 1), lambda i: (0, 0)),
            pl.BlockSpec((C, C), lambda i: (0, 0)),
            pl.BlockSpec((C, 1), lambda i: (0, 0)),
            pl.BlockSpec((T, T), lambda i: (0, 0)),
        ],
        out_specs=pl.BlockSpec((C, T), lambda i: (0, 0)),
        compiler_params=pltpu.CompilerParams(dimension_semantics=("arbitrary",)),
        cost_estimate=cost,
    )(x_t, wqkv, bqkv_c, wproj, bproj_c, mask)

    return out_t.T.reshape(B, L, C)


# --------------------------- pure-JAX reference -----------------------------
def attention_ref(x, wqkv, bqkv, wproj, bproj, *, series_len, num_heads):
    B, L, C = x.shape
    D, N, hd = series_len, L // series_len, C // num_heads
    scale = hd ** -0.5
    hp = jax.lax.Precision.HIGHEST
    xg = x.reshape(B, D, N, C)
    qkv = jnp.einsum("bdnc,ec->bdne", xg, wqkv, precision=hp) + bqkv
    qkv = qkv.reshape(B, D, N, 3, num_heads, hd)
    q = jnp.transpose(qkv[:, :, :, 0], (0, 1, 3, 2, 4))   # (B, D, H, N, hd)
    k = jnp.transpose(qkv[:, :, :, 1], (0, 1, 3, 2, 4))
    v = jnp.transpose(qkv[:, :, :, 2], (0, 1, 3, 2, 4))
    s = jnp.einsum("bdhne,bdhme->bdhnm", q, k, precision=hp) * scale
    p = jax.nn.softmax(s, axis=-1)
    ctx = jnp.einsum("bdhnm,bdhme->bdhne", p, v, precision=hp)
    ctx = jnp.transpose(ctx, (0, 1, 3, 2, 4)).reshape(B, D, N, C)
    out = jnp.einsum("bdnc,oc->bdno", ctx, wproj, precision=hp) + bproj
    return out.reshape(B, L, C)


# ----------------------------------- main ------------------------------------
if __name__ == "__main__":
    B, L, C = 2, 64, 32          # batch=2, seq=64 tokens (8 groups of 8), dim=32
    SERIES_LEN, NUM_HEADS = 8, 4

    key = jax.random.PRNGKey(0)
    k1, k2, k3, k4 = jax.random.split(key, 4)
    x = jax.random.normal(k1, (B, L, C), jnp.float32)
    wqkv = 0.02 * jax.random.normal(k2, (3 * C, C), jnp.float32)   # torch (out, in)
    bqkv = jnp.zeros((3 * C,), jnp.float32)                        # qkv_bias=False (default)
    wproj = 0.02 * jax.random.normal(k3, (C, C), jnp.float32)
    bproj = 0.02 * jax.random.normal(k4, (C,), jnp.float32)

    fwd = jax.jit(partial(attention_forward,
                          series_len=SERIES_LEN, num_heads=NUM_HEADS))
    out = fwd(x, wqkv, bqkv, wproj, bproj)
    jax.block_until_ready(out)

    ref = attention_ref(x, wqkv, bqkv, wproj, bproj,
                        series_len=SERIES_LEN, num_heads=NUM_HEADS)

    assert out.shape == (B, L, C), out.shape
    assert bool(jnp.all(jnp.isfinite(out)))
    err = float(jnp.max(jnp.abs(out - ref)))
    assert bool(jnp.allclose(out, ref, atol=2e-3, rtol=2e-3)), err
    print("KERNEL_OK")
</pallas_src>

<mosaic_0001>
module attributes {stable_mosaic.version = 11 : i64} {
  func.func @_attention_kernel(%arg0: i32, %arg1: memref<32x128xf32, #tpu.memory_space<vmem>>, %arg2: memref<96x32xf32, #tpu.memory_space<vmem>>, %arg3: memref<96x1xf32, #tpu.memory_space<vmem>>, %arg4: memref<32x32xf32, #tpu.memory_space<vmem>>, %arg5: memref<32x1xf32, #tpu.memory_space<vmem>>, %arg6: memref<128x128xf32, #tpu.memory_space<vmem>>, %arg7: memref<32x128xf32, #tpu.memory_space<vmem>>) attributes {dimension_semantics = [#tpu.dimension_semantics<arbitrary>], iteration_bounds = array<i64: 1>, scalar_prefetch = 0 : i64, scratch_operands = 0 : i64, tpu.core_type = #tpu.core_type<tc>, window_params = [{pipeline_mode = #tpu.pipeline_mode<synchronous>, transform_indices = @transform_0, window_bounds = array<i64: 32, 128>}, {pipeline_mode = #tpu.pipeline_mode<synchronous>, transform_indices = @transform_1, window_bounds = array<i64: 96, 32>}, {pipeline_mode = #tpu.pipeline_mode<synchronous>, transform_indices = @transform_2, window_bounds = array<i64: 96, 1>}, {pipeline_mode = #tpu.pipeline_mode<synchronous>, transform_indices = @transform_3, window_bounds = array<i64: 32, 32>}, {pipeline_mode = #tpu.pipeline_mode<synchronous>, transform_indices = @transform_4, window_bounds = array<i64: 32, 1>}, {pipeline_mode = #tpu.pipeline_mode<synchronous>, transform_indices = @transform_5, window_bounds = array<i64: 128, 128>}, {pipeline_mode = #tpu.pipeline_mode<synchronous>, transform_indices = @transform_6, window_bounds = array<i64: 32, 128>}]} {
    %c0 = arith.constant 0 : index
    %c0_0 = arith.constant 0 : index
    %0 = vector.load %arg1[%c0, %c0_0] : memref<32x128xf32, #tpu.memory_space<vmem>>, vector<32x128xf32>
    %c0_1 = arith.constant 0 : index
    %c0_2 = arith.constant 0 : index
    %1 = vector.load %arg2[%c0_1, %c0_2] : memref<96x32xf32, #tpu.memory_space<vmem>>, vector<96x32xf32>
    %2 = arith.truncf %1 : vector<96x32xf32> to vector<96x32xbf16>
    %3 = arith.truncf %0 : vector<32x128xf32> to vector<32x128xbf16>
    %cst = arith.constant dense<0.000000e+00> : vector<96x128xf32>
    %4 = tpu.matmul %2, %3, %cst {dimension_numbers = #tpu.dot_dimension_numbers<[1], [0], [0], [1], [0, 0, 1, 1], [], []>} : vector<96x32xbf16>, vector<32x128xbf16>, vector<96x128xf32> -> vector<96x128xf32>
    %c0_3 = arith.constant 0 : index
    %c0_4 = arith.constant 0 : index
    %5 = vector.load %arg3[%c0_3, %c0_4] : memref<96x1xf32, #tpu.memory_space<vmem>>, vector<96x1xf32>
    %6 = vector.broadcast %5 : vector<96x1xf32> to vector<96x128xf32>
    %7 = arith.addf %4, %6 : vector<96x128xf32>
    %c0_5 = arith.constant 0 : index
    %c0_6 = arith.constant 0 : index
    %8 = vector.load %arg6[%c0_5, %c0_6] : memref<128x128xf32, #tpu.memory_space<vmem>>, vector<128x128xf32>
    %9 = vector.extract_strided_slice %7 {offsets = [0, 0], sizes = [8, 128], strides = [1, 1]} : vector<96x128xf32> to vector<8x128xf32>
    %10 = vector.extract_strided_slice %7 {offsets = [32, 0], sizes = [8, 128], strides = [1, 1]} : vector<96x128xf32> to vector<8x128xf32>
    %11 = vector.extract_strided_slice %7 {offsets = [64, 0], sizes = [8, 128], strides = [1, 1]} : vector<96x128xf32> to vector<8x128xf32>
    %12 = tpu.transpose %9, [1, 0] : vector<8x128xf32> -> vector<128x8xf32>
    %13 = arith.truncf %12 : vector<128x8xf32> to vector<128x8xbf16>
    %14 = arith.truncf %10 : vector<8x128xf32> to vector<8x128xbf16>
    %cst_7 = arith.constant dense<0.000000e+00> : vector<128x128xf32>
    %15 = tpu.matmul %13, %14, %cst_7 {dimension_numbers = #tpu.dot_dimension_numbers<[1], [0], [0], [1], [0, 0, 1, 1], [], []>} : vector<128x8xbf16>, vector<8x128xbf16>, vector<128x128xf32> -> vector<128x128xf32>
    %cst_8 = arith.constant 0.353553385 : f32
    %16 = vector.broadcast %cst_8 : f32 to vector<128x128xf32>
    %17 = arith.mulf %15, %16 : vector<128x128xf32>
    %18 = arith.addf %17, %8 : vector<128x128xf32>
    %cst_9 = arith.constant dense<0xFF800000> : vector<128xf32>
    %19 = vector.multi_reduction <maximumf>, %18, %cst_9 [1] : vector<128x128xf32> to vector<128xf32>
    %20 = vector.shape_cast %19 : vector<128xf32> to vector<128x1xf32>
    %21 = vector.broadcast %20 : vector<128x1xf32> to vector<128x128xf32>
    %22 = arith.subf %18, %21 : vector<128x128xf32>
    %23 = math.exp %22 : vector<128x128xf32>
    %cst_10 = arith.constant dense<0.000000e+00> : vector<128xf32>
    %24 = vector.multi_reduction <add>, %23, %cst_10 [1] : vector<128x128xf32> to vector<128xf32>
    %25 = vector.shape_cast %24 : vector<128xf32> to vector<128x1xf32>
    %26 = vector.broadcast %25 : vector<128x1xf32> to vector<128x128xf32>
    %27 = arith.divf %23, %26 : vector<128x128xf32>
    %28 = arith.truncf %11 : vector<8x128xf32> to vector<8x128xbf16>
    %29 = arith.truncf %27 : vector<128x128xf32> to vector<128x128xbf16>
    %cst_11 = arith.constant dense<0.000000e+00> : vector<8x128xf32>
    %30 = tpu.matmul %28, %29, %cst_11 {dimension_numbers = #tpu.dot_dimension_numbers<[1], [1], [0], [0], [0, 0, 1, 0], [], []>} : vector<8x128xbf16>, vector<128x128xbf16>, vector<8x128xf32> -> vector<8x128xf32>
    %31 = vector.extract_strided_slice %7 {offsets = [8, 0], sizes = [8, 128], strides = [1, 1]} : vector<96x128xf32> to vector<8x128xf32>
    %32 = vector.extract_strided_slice %7 {offsets = [40, 0], sizes = [8, 128], strides = [1, 1]} : vector<96x128xf32> to vector<8x128xf32>
    %33 = vector.extract_strided_slice %7 {offsets = [72, 0], sizes = [8, 128], strides = [1, 1]} : vector<96x128xf32> to vector<8x128xf32>
    %34 = tpu.transpose %31, [1, 0] : vector<8x128xf32> -> vector<128x8xf32>
    %35 = arith.truncf %34 : vector<128x8xf32> to vector<128x8xbf16>
    %36 = arith.truncf %32 : vector<8x128xf32> to vector<8x128xbf16>
    %cst_12 = arith.constant dense<0.000000e+00> : vector<128x128xf32>
    %37 = tpu.matmul %35, %36, %cst_12 {dimension_numbers = #tpu.dot_dimension_numbers<[1], [0], [0], [1], [0, 0, 1, 1], [], []>} : vector<128x8xbf16>, vector<8x128xbf16>, vector<128x128xf32> -> vector<128x128xf32>
    %cst_13 = arith.constant 0.353553385 : f32
    %38 = vector.broadcast %cst_13 : f32 to vector<128x128xf32>
    %39 = arith.mulf %37, %38 : vector<128x128xf32>
    %40 = arith.addf %39, %8 : vector<128x128xf32>
    %cst_14 = arith.constant dense<0xFF800000> : vector<128xf32>
    %41 = vector.multi_reduction <maximumf>, %40, %cst_14 [1] : vector<128x128xf32> to vector<128xf32>
    %42 = vector.shape_cast %41 : vector<128xf32> to vector<128x1xf32>
    %43 = vector.broadcast %42 : vector<128x1xf32> to vector<128x128xf32>
    %44 = arith.subf %40, %43 : vector<128x128xf32>
    %45 = math.exp %44 : vector<128x128xf32>
    %cst_15 = arith.constant dense<0.000000e+00> : vector<128xf32>
    %46 = vector.multi_reduction <add>, %45, %cst_15 [1] : vector<128x128xf32> to vector<128xf32>
    %47 = vector.shape_cast %46 : vector<128xf32> to vector<128x1xf32>
    %48 = vector.broadcast %47 : vector<128x1xf32> to vector<128x128xf32>
    %49 = arith.divf %45, %48 : vector<128x128xf32>
    %50 = arith.truncf %33 : vector<8x128xf32> to vector<8x128xbf16>
    %51 = arith.truncf %49 : vector<128x128xf32> to vector<128x128xbf16>
    %cst_16 = arith.constant dense<0.000000e+00> : vector<8x128xf32>
    %52 = tpu.matmul %50, %51, %cst_16 {dimension_numbers = #tpu.dot_dimension_numbers<[1], [1], [0], [0], [0, 0, 1, 0], [], []>} : vector<8x128xbf16>, vector<128x128xbf16>, vector<8x128xf32> -> vector<8x128xf32>
    %53 = vector.extract_strided_slice %7 {offsets = [16, 0], sizes = [8, 128], strides = [1, 1]} : vector<96x128xf32> to vector<8x128xf32>
    %54 = vector.extract_strided_slice %7 {offsets = [48, 0], sizes = [8, 128], strides = [1, 1]} : vector<96x128xf32> to vector<8x128xf32>
    %55 = vector.extract_strided_slice %7 {offsets = [80, 0], sizes = [8, 128], strides = [1, 1]} : vector<96x128xf32> to vector<8x128xf32>
    %56 = tpu.transpose %53, [1, 0] : vector<8x128xf32> -> vector<128x8xf32>
    %57 = arith.truncf %56 : vector<128x8xf32> to vector<128x8xbf16>
    %58 = arith.truncf %54 : vector<8x128xf32> to vector<8x128xbf16>
    %cst_17 = arith.constant dense<0.000000e+00> : vector<128x128xf32>
    %59 = tpu.matmul %57, %58, %cst_17 {dimension_numbers = #tpu.dot_dimension_numbers<[1], [0], [0], [1], [0, 0, 1, 1], [], []>} : vector<128x8xbf16>, vector<8x128xbf16>, vector<128x128xf32> -> vector<128x128xf32>
    %cst_18 = arith.constant 0.353553385 : f32
    %60 = vector.broadcast %cst_18 : f32 to vector<128x128xf32>
    %61 = arith.mulf %59, %60 : vector<128x128xf32>
    %62 = arith.addf %61, %8 : vector<128x128xf32>
    %cst_19 = arith.constant dense<0xFF800000> : vector<128xf32>
    %63 = vector.multi_reduction <maximumf>, %62, %cst_19 [1] : vector<128x128xf32> to vector<128xf32>
    %64 = vector.shape_cast %63 : vector<128xf32> to vector<128x1xf32>
    %65 = vector.broadcast %64 : vector<128x1xf32> to vector<128x128xf32>
    %66 = arith.subf %62, %65 : vector<128x128xf32>
    %67 = math.exp %66 : vector<128x128xf32>
    %cst_20 = arith.constant dense<0.000000e+00> : vector<128xf32>
    %68 = vector.multi_reduction <add>, %67, %cst_20 [1] : vector<128x128xf32> to vector<128xf32>
    %69 = vector.shape_cast %68 : vector<128xf32> to vector<128x1xf32>
    %70 = vector.broadcast %69 : vector<128x1xf32> to vector<128x128xf32>
    %71 = arith.divf %67, %70 : vector<128x128xf32>
    %72 = arith.truncf %55 : vector<8x128xf32> to vector<8x128xbf16>
    %73 = arith.truncf %71 : vector<128x128xf32> to vector<128x128xbf16>
    %cst_21 = arith.constant dense<0.000000e+00> : vector<8x128xf32>
    %74 = tpu.matmul %72, %73, %cst_21 {dimension_numbers = #tpu.dot_dimension_numbers<[1], [1], [0], [0], [0, 0, 1, 0], [], []>} : vector<8x128xbf16>, vector<128x128xbf16>, vector<8x128xf32> -> vector<8x128xf32>
    %75 = vector.extract_strided_slice %7 {offsets = [24, 0], sizes = [8, 128], strides = [1, 1]} : vector<96x128xf32> to vector<8x128xf32>
    %76 = vector.extract_strided_slice %7 {offsets = [56, 0], sizes = [8, 128], strides = [1, 1]} : vector<96x128xf32> to vector<8x128xf32>
    %77 = vector.extract_strided_slice %7 {offsets = [88, 0], sizes = [8, 128], strides = [1, 1]} : vector<96x128xf32> to vector<8x128xf32>
    %78 = tpu.transpose %75, [1, 0] : vector<8x128xf32> -> vector<128x8xf32>
    %79 = arith.truncf %78 : vector<128x8xf32> to vector<128x8xbf16>
    %80 = arith.truncf %76 : vector<8x128xf32> to vector<8x128xbf16>
    %cst_22 = arith.constant dense<0.000000e+00> : vector<128x128xf32>
    %81 = tpu.matmul %79, %80, %cst_22 {dimension_numbers = #tpu.dot_dimension_numbers<[1], [0], [0], [1], [0, 0, 1, 1], [], []>} : vector<128x8xbf16>, vector<8x128xbf16>, vector<128x128xf32> -> vector<128x128xf32>
    %cst_23 = arith.constant 0.353553385 : f32
    %82 = vector.broadcast %cst_23 : f32 to vector<128x128xf32>
    %83 = arith.mulf %81, %82 : vector<128x128xf32>
    %84 = arith.addf %83, %8 : vector<128x128xf32>
    %cst_24 = arith.constant dense<0xFF800000> : vector<128xf32>
    %85 = vector.multi_reduction <maximumf>, %84, %cst_24 [1] : vector<128x128xf32> to vector<128xf32>
    %86 = vector.shape_cast %85 : vector<128xf32> to vector<128x1xf32>
    %87 = vector.broadcast %86 : vector<128x1xf32> to vector<128x128xf32>
    %88 = arith.subf %84, %87 : vector<128x128xf32>
    %89 = math.exp %88 : vector<128x128xf32>
    %cst_25 = arith.constant dense<0.000000e+00> : vector<128xf32>
    %90 = vector.multi_reduction <add>, %89, %cst_25 [1] : vector<128x128xf32> to vector<128xf32>
    %91 = vector.shape_cast %90 : vector<128xf32> to vector<128x1xf32>
    %92 = vector.broadcast %91 : vector<128x1xf32> to vector<128x128xf32>
    %93 = arith.divf %89, %92 : vector<128x128xf32>
    %94 = arith.truncf %77 : vector<8x128xf32> to vector<8x128xbf16>
    %95 = arith.truncf %93 : vector<128x128xf32> to vector<128x128xbf16>
    %cst_26 = arith.constant dense<0.000000e+00> : vector<8x128xf32>
    %96 = tpu.matmul %94, %95, %cst_26 {dimension_numbers = #tpu.dot_dimension_numbers<[1], [1], [0], [0], [0, 0, 1, 0], [], []>} : vector<8x128xbf16>, vector<128x128xbf16>, vector<8x128xf32> -> vector<8x128xf32>
    %97 = tpu.concatenate %30, %52, %74, %96 in 0 : vector<8x128xf32>, vector<8x128xf32>, vector<8x128xf32>, vector<8x128xf32> -> vector<32x128xf32>
    %c0_27 = arith.constant 0 : index
    %c0_28 = arith.constant 0 : index
    %98 = vector.load %arg4[%c0_27, %c0_28] : memref<32x32xf32, #tpu.memory_space<vmem>>, vector<32x32xf32>
    %99 = arith.truncf %98 : vector<32x32xf32> to vector<32x32xbf16>
    %100 = arith.truncf %97 : vector<32x128xf32> to vector<32x128xbf16>
    %cst_29 = arith.constant dense<0.000000e+00> : vector<32x128xf32>
    %101 = tpu.matmul %99, %100, %cst_29 {dimension_numbers = #tpu.dot_dimension_numbers<[1], [0], [0], [1], [0, 0, 1, 1], [], []>} : vector<32x32xbf16>, vector<32x128xbf16>, vector<32x128xf32> -> vector<32x128xf32>
    %c0_30 = arith.constant 0 : index
    %c0_31 = arith.constant 0 : index
    %102 = vector.load %arg5[%c0_30, %c0_31] : memref<32x1xf32, #tpu.memory_space<vmem>>, vector<32x1xf32>
    %103 = vector.broadcast %102 : vector<32x1xf32> to vector<32x128xf32>
    %104 = arith.addf %101, %103 : vector<32x128xf32>
    %c0_32 = arith.constant 0 : index
    %c0_33 = arith.constant 0 : index
    %105 = vector.load %arg7[%c0_32, %c0_33] : memref<32x128xf32, #tpu.memory_space<vmem>>, vector<32x128xf32>
    tpu.vector_store %arg7[%c0_32, %c0_33], %104 {strides = array<i32>} : memref<32x128xf32, #tpu.memory_space<vmem>>, vector<32x128xf32>,
    return
  }
  func.func @transform_0(%arg0: i32) -> (i32, i32) {
    %c0_i32 = arith.constant 0 : i32
    %c0_i32_0 = arith.constant 0 : i32
    %c0_i32_1 = arith.constant 0 : i32
    return %c0_i32, %c0_i32_0 : i32, i32
  }
  func.func @transform_1(%arg0: i32) -> (i32, i32) {
    %c0_i32 = arith.constant 0 : i32
    %c0_i32_0 = arith.constant 0 : i32
    %c0_i32_1 = arith.constant 0 : i32
    return %c0_i32, %c0_i32_0 : i32, i32
  }
  func.func @transform_2(%arg0: i32) -> (i32, i32) {
    %c0_i32 = arith.constant 0 : i32
    %c0_i32_0 = arith.constant 0 : i32
    %c0_i32_1 = arith.constant 0 : i32
    return %c0_i32, %c0_i32_0 : i32, i32
  }
  func.func @transform_3(%arg0: i32) -> (i32, i32) {
    %c0_i32 = arith.constant 0 : i32
    %c0_i32_0 = arith.constant 0 : i32
    %c0_i32_1 = arith.constant 0 : i32
    return %c0_i32, %c0_i32_0 : i32, i32
  }
  func.func @transform_4(%arg0: i32) -> (i32, i32) {
    %c0_i32 = arith.constant 0 : i32
    %c0_i32_0 = arith.constant 0 : i32
    %c0_i32_1 = arith.constant 0 : i32
    return %c0_i32, %c0_i32_0 : i32, i32
  }
  func.func @transform_5(%arg0: i32) -> (i32, i32) {
    %c0_i32 = arith.constant 0 : i32
    %c0_i32_0 = arith.constant 0 : i32
    %c0_i32_1 = arith.constant 0 : i32
    return %c0_i32, %c0_i32_0 : i32, i32
  }
  func.func @transform_6(%arg0: i32) -> (i32, i32) {
    %c0_i32 = arith.constant 0 : i32
    %c0_i32_0 = arith.constant 0 : i32
    %c0_i32_1 = arith.constant 0 : i32
    return %c0_i32, %c0_i32_0 : i32, i32
  }
}

</mosaic_0001>

<bundles_post_ra>
// kernel: attention_forward.1
= control target key start
LH: loop header
LB: loop body
LE: loop exit
PB: predicated region body
PF: predicated region fallthrough
CT: control target
= control target key end

     0   :  { %v2642_v3 = vmov 0   ;;  %vm120_vm0 = vcmask 261120   ;;  %vm302_vm1 = vcmask 1043456   ;;  %vm277_vm2 = vcmask 64512   ;;  %s3554_s0 = inlined_call_operand.vmem [shape: f32[32,128], index: 0, kind: input, shape index: {}]   ;;  %s3555_s1 = inlined_call_operand.vmem [shape: f32[96,32], index: 1, kind: input, shape index: {}]   ;;  %s3556_s2 = inlined_call_operand.vmem [shape: f32[96,1], index: 2, kind: input, shape index: {}]   ;;  %s3557_s5 = inlined_call_operand.vmem [shape: f32[128,128], index: 5, kind: input, shape index: {}]   ;;  %s3558_s4 = inlined_call_operand.vmem [shape: f32[32,1], index: 4, kind: input, shape index: {}]   ;;  %s3559_s3 = inlined_call_operand.vmem [shape: f32[32,32], index: 3, kind: input, shape index: {}]   ;;  %s3560_s6 = inlined_call_operand.vmem [shape: f32[32,128], index: 6, kind: output, shape index: {}]  }
   0x1   :  { %v24_v0 = vld [vmem:[%s3554_s0] sm:$0xff]  ;;  %v25_v1 = vld [vmem:[%s3554_s0 + $0x8] sm:$0xff]  ;;  %v26_v2 = vld [vmem:[%s3554_s0 + $0x10] sm:$0xff]  ;;  %2204 = vset.pattern.permute.xlu0 %v2642_v3  ;;  %2205 = vset.pattern.permute.xlu1 %v2642_v3  ;;  %vm2644_vm3 = vmmov 0  }
   0x2   :  { %v46_v4 = vpack.c.bf16 %v25_v1, %v24_v0  ;;  %v27_v5 = vld [vmem:[%s3554_s0 + $0x18] sm:$0xff]  ;;  %v28_v6 = vld [vmem:[%s3555_s1] sm:$0xff]  ;;  %v29_v7 = vld [vmem:[%s3555_s1 + $0x8] sm:$0xff] }
   0x3   :  { %v47_v8 = vpack.c.bf16 %v27_v5, %v26_v2  ;;  %v40_v9 = vpack.c.bf16 %v29_v7, %v28_v6  ;;  %v48_v10 = vld [vmem:[%s3556_s2] sm:$0xff]  ;;  %v30_v11 = vld [vmem:[%s3555_s1 + $0x10] sm:$0xff]  ;;  %v31_v12 = vld [vmem:[%s3555_s1 + $0x18] sm:$0xff] }
   0x4   :  { %2017 = vmatprep.subr.bf16.mxu0 %v46_v4  ;;  %62 = vperm.xlu0 %2204, %v48_v10   ;;  %v49_v13 = vld [vmem:[%s3556_s2 + $0x8] sm:$0xff]  ;;  %v32_v14 = vld [vmem:[%s3555_s1 + $0x20] sm:$0xff]  ;;  %v41_v16 = vpack.c.bf16 %v31_v12, %v30_v11  ;;  %v34_v18 = vld [vmem:[%s3555_s1 + $0x30] sm:$0xff] }
   0x5   :  { %2018 = vmatpush3.bf16.msra.mxu0 %v46_v4  ;;  %2021 = vmatprep.mubr.msk.bf16.mxu0 %vm120_vm0, %v40_v9  ;;  %v33_v15 = vld [vmem:[%s3555_s1 + $0x28] sm:$0xff]  ;;  %v35_v19 = vld [vmem:[%s3555_s1 + $0x38] sm:$0xff]  ;;  %v52_v21 = vld [vmem:[%s3556_s2 + $0x20] sm:$0xff] }
   0x6   :  { %2019 = vmatprep.subr.bf16.mxu0 %v47_v8  ;;  %2193 = vmatprep.subr.bf16.mxu1 %v46_v4  ;;  %v42_v17 = vpack.c.bf16 %v33_v15, %v32_v14  ;;  %v43_v20 = vpack.c.bf16 %v35_v19, %v34_v18  ;;  %v53_v22 = vld [vmem:[%s3556_s2 + $0x28] sm:$0xff]  ;;  %v36_v38 = vld [vmem:[%s3555_s1 + $0x40] sm:$0xff]  ;;  %v38_v42 = vld [vmem:[%s3555_s1 + $0x50] sm:$0xff] }
   0x7   :  { %2195 = vmatpush3.bf16.msra.mxu1 %v46_v4  ;;  %82 = vperm.xlu1 %2205, %v52_v21   ;;  %v37_v39 = vld [vmem:[%s3555_s1 + $0x48] sm:$0xff]  ;;  %v39_v43 = vld [vmem:[%s3555_s1 + $0x58] sm:$0xff] }
   0x8   :  { %67 = vperm.xlu0 %2204, %v49_v13   ;;  %2194 = vmatprep.subr.bf16.mxu1 %v47_v8  ;;  %v44_v41 = vpack.c.bf16 %v37_v39, %v36_v38  ;;  %v45_v46 = vpack.c.bf16 %v39_v43, %v38_v42 }
   0x9   :  { %2020 = vmatpush3.bf16.msra.mxu0 %v47_v8 }
   0xa   :  { %2029 = vmatprep.mubr.msk.bf16.mxu1 %vm120_vm0, %v44_v41 }
   0xb   :  { %2196 = vmatpush3.bf16.msra.mxu1 %v47_v8  ;;  %87 = vperm.xlu1 %2205, %v53_v22  }
   0xc   :  { %2022 = vmatmul.mubr.msk.bf16.vlgmr.msra.gmra.mrb[0].mxu0 %vm120_vm0, %v41_v16 }
   0xd   :  { %2025 = vmatprep.mubr.msk.bf16.mxu0 %vm120_vm0, %v42_v17 }
   0xe   :  { %2030 = vmatmul.mubr.msk.bf16.vlgmr.msra.gmra.mrb[0].mxu1 %vm120_vm0, %v45_v46 }
  0x14   :  { %2026 = vmatmul.mubr.msk.bf16.gmra.mrb[4].mxu0 %vm120_vm0, %v43_v20 }
  0x83   :  { %v63_v23 = vpop.permute.xlu0 %62 }
  0x86   :  { %v83_v32 = vpop.permute.xlu1 %82 }
  0x87   :  { %v68_v27 = vpop.permute.xlu0 %67 }
  0x8a   :  { %v88_v37 = vpop.permute.xlu1 %87 }
  0xdf   :  { %v2732_v24 = vpop.f32.mrb[0].mxu0 }
  0xe0   :  { %v173_v25 = vpop.f32.mrb[1].mxu0 }
  0xe1   :  { %v2734_v26 = vpop.f32.mrb[2].mxu0  ;;  %v174_v29 = vadd.f32 %v173_v25, %v63_v23 }
  0xe2   :  { %v176_v28 = vpop.f32.mrb[3].mxu0 }
  0xe3   :  { %v177_v30 = vadd.f32 %v176_v28, %v68_v27 }
  0xe5   :  { %v2206_v31 = vpack.i.bf16 %v177_v30, %v174_v29 }
  0xe7   :  { %2207 = vxpose.xlu0.b32.start.end [1/1] (short) %v2206_v31, 128  ;;  %v2736_v33 = vpop.f32.mrb[4].mxu0 }
  0xe8   :  { %v189_v34 = vpop.f32.mrb[5].mxu0 }
  0xe9   :  { %v190_v35 = vadd.f32 %v189_v34, %v83_v32  ;;  %v2738_v36 = vpop.f32.mrb[6].mxu0 }
  0xea   :  { %v192_v40 = vpop.f32.mrb[7].mxu0 }
  0xeb   :  { %v276_v44 = vpack.c.bf16 %v190_v35, %v190_v35  ;;  %v193_v45 = vadd.f32 %v192_v40, %v88_v37 }
  0xed   :  { %v304_v47 = vsel %vm302_vm1, %v276_v44, 0  ;;  %v668_v48 = vpack.c.bf16 %v193_v45, %v193_v45  ;;  %2197 = vmatprep.subr.msk.bf16.mxu1 %vm302_vm1, %v276_v44 }
  0xee   :  { %2034 = vmatpush3.bf16.msra.mxu1 %v304_v47 }
  0xef   :  { %v694_v49 = vsel %vm302_vm1, %v668_v48, 0  ;;  %2198 = vmatprep.subr.msk.bf16.mxu0 %vm302_vm1, %v668_v48 }
  0xf0   :  { %2072 = vmatpush3.bf16.msra.mxu0 %v694_v49 }
 0x167   :  { %v2208_v50 = vpop.trf.xlu0 }
 0x168   :  { %v2212_v51 = vunpack.i.h.bf16 %v2208_v50  ;;  %v2209_v52 = vunpack.i.l.bf16 %v2208_v50 }
 0x16b   :  { %v2213_v53 = vpop.trf.xlu0 }
 0x16c   :  { %v2217_v54 = vunpack.i.h.bf16 %v2213_v53  ;;  %v2214_v55 = vunpack.i.l.bf16 %v2213_v53 }
 0x16e   :  { %v268_v56 = vpack.c.bf16 %v2214_v55, %v2209_v52  ;;  %v660_v57 = vpack.c.bf16 %v2217_v54, %v2212_v51  ;;  %v2774_v54 = vpop.f32.mrb[0].mxu1 }
 0x16f   :  { %v2218_v58 = vpop.trf.xlu0  ;;  %v2776_v55 = vpop.f32.mrb[1].mxu1 }
 0x170   :  { %2035 = vmatprep.mubr.msk.bf16.mxu1 %vm277_vm2, %v268_v56  ;;  %2073 = vmatprep.mubr.msk.bf16.mxu0 %vm277_vm2, %v660_v57  ;;  %v2222_v59 = vunpack.i.h.bf16 %v2218_v58  ;;  %v2219_v60 = vunpack.i.l.bf16 %v2218_v58  ;;  %v2778_v56 = vpop.f32.mrb[2].mxu1 }
 0x171   :  { %v2780_v57 = vpop.f32.mrb[3].mxu1 }
 0x173   :  { %v2223_v61 = vpop.trf.xlu0 }
 0x174   :  { %v2227_v62 = vunpack.i.h.bf16 %v2223_v61  ;;  %v2224_v63 = vunpack.i.l.bf16 %v2223_v61 }
 0x176   :  { %v269_v0 = vpack.c.bf16 %v2224_v63, %v2219_v60  ;;  %v661_v1 = vpack.c.bf16 %v2227_v62, %v2222_v59  ;;  %v220_v62 = vld [vmem:[%s3557_s5] sm:$0xff] }
 0x177   :  { %v2228_v2 = vpop.trf.xlu0 }
 0x178   :  { %2036 = vmatmul.mubr.msk.bf16.vlgmr.msra.gmra.mrb[4].mxu1 %vm277_vm2, %v269_v0  ;;  %2074 = vmatmul.mubr.msk.bf16.vlgmr.msra.gmra.mrb[8].mxu0 %vm277_vm2, %v661_v1  ;;  %v2232_v3 = vunpack.i.h.bf16 %v2228_v2  ;;  %v2229_v4 = vunpack.i.l.bf16 %v2228_v2 }
 0x17b   :  { %v2233_v5 = vpop.trf.xlu0 }
 0x17c   :  { %v2237_v6 = vunpack.i.h.bf16 %v2233_v5  ;;  %v2234_v7 = vunpack.i.l.bf16 %v2233_v5 }
 0x17e   :  { %v270_v8 = vpack.c.bf16 %v2234_v7, %v2229_v4  ;;  %v662_v9 = vpack.c.bf16 %v2237_v6, %v2232_v3  ;;  %v221_v4 = vld [vmem:[%s3557_s5 + $0x8] sm:$0xff] }
 0x17f   :  { %v2238_v10 = vpop.trf.xlu0 }
 0x180   :  { %2039 = vmatprep.mubr.msk.bf16.mxu1 %vm277_vm2, %v270_v8  ;;  %2077 = vmatprep.mubr.msk.bf16.mxu0 %vm277_vm2, %v662_v9  ;;  %v2242_v11 = vunpack.i.h.bf16 %v2238_v10  ;;  %v2239_v12 = vunpack.i.l.bf16 %v2238_v10  ;;  %v222_v8 = vld [vmem:[%s3557_s5 + $0x10] sm:$0xff] }
 0x183   :  { %v2243_v13 = vpop.trf.xlu0 }
 0x184   :  { %v2247_v14 = vunpack.i.h.bf16 %v2243_v13  ;;  %v2244_v15 = vunpack.i.l.bf16 %v2243_v13 }
 0x186   :  { %v271_v16 = vpack.c.bf16 %v2244_v15, %v2239_v12  ;;  %v663_v17 = vpack.c.bf16 %v2247_v14, %v2242_v11  ;;  %v223_v12 = vld [vmem:[%s3557_s5 + $0x18] sm:$0xff] }
 0x187   :  { %v2248_v18 = vpop.trf.xlu0 }
 0x188   :  { %2040 = vmatmul.mubr.msk.bf16.gmra.mrb[8].mxu1 %vm277_vm2, %v271_v16  ;;  %2078 = vmatmul.mubr.msk.bf16.gmra.mrb[12].mxu0 %vm277_vm2, %v663_v17  ;;  %v2252_v19 = vunpack.i.h.bf16 %v2248_v18  ;;  %v2249_v20 = vunpack.i.l.bf16 %v2248_v18 }
 0x18b   :  { %v2253_v21 = vpop.trf.xlu0 }
 0x18c   :  { %v2257_v22 = vunpack.i.h.bf16 %v2253_v21  ;;  %v2254_v23 = vunpack.i.l.bf16 %v2253_v21 }
 0x18e   :  { %v272_v25 = vpack.c.bf16 %v2254_v23, %v2249_v20  ;;  %v664_v27 = vpack.c.bf16 %v2257_v22, %v2252_v19 }
 0x18f   :  { %v2258_v28 = vpop.trf.xlu0 }
 0x190   :  { %2043 = vmatprep.mubr.msk.bf16.mxu1 %vm277_vm2, %v272_v25  ;;  %2081 = vmatprep.mubr.msk.bf16.mxu0 %vm277_vm2, %v664_v27  ;;  %v2262_v29 = vunpack.i.h.bf16 %v2258_v28  ;;  %v2259_v30 = vunpack.i.l.bf16 %v2258_v28 }
 0x193   :  { %v2263_v31 = vpop.trf.xlu0 }
 0x194   :  { %v2267_v32 = vunpack.i.h.bf16 %v2263_v31  ;;  %v2264_v34 = vunpack.i.l.bf16 %v2263_v31 }
 0x196   :  { %v273_v35 = vpack.c.bf16 %v2264_v34, %v2259_v30  ;;  %v665_v37 = vpack.c.bf16 %v2267_v32, %v2262_v29  ;;  %v226_v34 = vld [vmem:[%s3557_s5 + $0x30] sm:$0xff] }
 0x197   :  { %v2268_v38 = vpop.trf.xlu0 }
 0x198   :  { %2044 = vmatmul.mubr.msk.bf16.gmra.mrb[12].mxu1 %vm277_vm2, %v273_v35  ;;  %2082 = vmatmul.mubr.msk.bf16.gmra.mrb[16].mxu0 %vm277_vm2, %v665_v37  ;;  %v2272_v39 = vunpack.i.h.bf16 %v2268_v38  ;;  %v2269_v40 = vunpack.i.l.bf16 %v2268_v38 }
 0x19b   :  { %v2273_v41 = vpop.trf.xlu0 }
 0x19c   :  { %v2277_v42 = vunpack.i.h.bf16 %v2273_v41  ;;  %v2274_v43 = vunpack.i.l.bf16 %v2273_v41 }
 0x19e   :  { %v274_v44 = vpack.c.bf16 %v2274_v43, %v2269_v40  ;;  %v666_v45 = vpack.c.bf16 %v2277_v42, %v2272_v39  ;;  %v224_v40 = vld [vmem:[%s3557_s5 + $0x20] sm:$0xff] }
 0x19f   :  { %v2278_v46 = vpop.trf.xlu0 }
 0x1a0   :  { %2047 = vmatprep.mubr.msk.bf16.mxu1 %vm277_vm2, %v274_v44  ;;  %2085 = vmatprep.mubr.msk.bf16.mxu0 %vm277_vm2, %v666_v45  ;;  %v2282_v47 = vunpack.i.h.bf16 %v2278_v46  ;;  %v2279_v48 = vunpack.i.l.bf16 %v2278_v46 }
 0x1a3   :  { %v2283_v49 = vpop.trf.xlu0 }
 0x1a4   :  { %v2287_v50 = vunpack.i.h.bf16 %v2283_v49  ;;  %v2284_v51 = vunpack.i.l.bf16 %v2283_v49  ;;  %v227_v49 = vld [vmem:[%s3557_s5 + $0x38] sm:$0xff] }
 0x1a6   :  { %v275_v52 = vpack.c.bf16 %v2284_v51, %v2279_v48  ;;  %v667_v53 = vpack.c.bf16 %v2287_v50, %v2282_v47 }
 0x1a8   :  { %2048 = vmatmul.mubr.msk.bf16.gmra.mrb[16].mxu1 %vm277_vm2, %v275_v52  ;;  %2086 = vmatmul.mubr.msk.bf16.gmra.mrb[20].mxu0 %vm277_vm2, %v667_v53 }
 0x24b   :  { %v2037_v58 = vpop.f32.mrb[4].mxu1  ;;  %v2075_v59 = vpop.f32.mrb[8].mxu0 }
 0x24c   :  { %v340_v60 = vpop.f32.mrb[5].mxu1  ;;  %v730_v61 = vpop.f32.mrb[9].mxu0  ;;  %v405_v5 = vmul.f32 0.35355338, %v2037_v58  ;;  %v795_v13 = vmul.f32 0.35355338, %v2075_v59 }
 0x24d   :  { %v403_v63 = vmul.f32 0.35355338, %v340_v60  ;;  %v2038_v0 = vpop.f32.mrb[6].mxu1  ;;  %v2076_v1 = vpop.f32.mrb[10].mxu0  ;;  %v793_v15 = vmul.f32 0.35355338, %v730_v61 }
 0x24e   :  { %v343_v2 = vpop.f32.mrb[7].mxu1  ;;  %v733_v3 = vpop.f32.mrb[11].mxu0  ;;  %v406_v10 = vmul.f32 0.35355338, %v2038_v0  ;;  %v2797_v11 = vadd.f32 %v405_v5, %v222_v8  ;;  %v2806_v16 = vadd.f32 %v795_v13, %v222_v8  ;;  %v796_v27 = vmul.f32 0.35355338, %v2076_v1 }
 0x24f   :  { %v404_v6 = vmul.f32 0.35355338, %v343_v2  ;;  %v2788_v7 = vadd.f32 %v403_v63, %v220_v62  ;;  %v2809_v28 = vadd.f32 %v793_v15, %v220_v62  ;;  %v794_v29 = vmul.f32 0.35355338, %v733_v3  ;;  %v225_v58 = vld [vmem:[%s3557_s5 + $0x28] sm:$0xff]  ;;  %v235_v3 = vld [vmem:[%s3557_s5 + $0x78] sm:$0xff] }
 0x250   :  { %v2803_v14 = vadd.f32 %v406_v10, %v223_v12  ;;  %v2812_v30 = vadd.f32 %v796_v27, %v223_v12  ;;  %v230_v27 = vld [vmem:[%s3557_s5 + $0x50] sm:$0xff] }
 0x251   :  { %435 = vmax.xlane.f32.xlu1 %v2788_v7  ;;  %v2794_v9 = vadd.f32 %v404_v6, %v221_v4  ;;  %v2815_v32 = vadd.f32 %v794_v29, %v221_v4 }
 0x253   :  { %437 = vmax.xlane.f32.xlu0 %v2794_v9 }
 0x255   :  { %439 = vmax.xlane.f32.xlu1 %v2797_v11 }
 0x259   :  { %441 = vmax.xlane.f32.xlu1 %v2803_v14 }
 0x25b   :  { %v2079_v17 = vpop.f32.mrb[12].mxu0  ;;  %v2041_v18 = vpop.f32.mrb[8].mxu1 }
 0x25c   :  { %v356_v19 = vpop.f32.mrb[9].mxu1  ;;  %v746_v20 = vpop.f32.mrb[13].mxu0  ;;  %v409_v31 = vmul.f32 0.35355338, %v2041_v18  ;;  %v799_v50 = vmul.f32 0.35355338, %v2079_v17 }
 0x25d   :  { %829 = vmax.xlane.f32.xlu1 %v2806_v16  ;;  %v2042_v21 = vpop.f32.mrb[10].mxu1  ;;  %v2080_v22 = vpop.f32.mrb[14].mxu0  ;;  %v407_v35 = vmul.f32 0.35355338, %v356_v19  ;;  %v797_v59 = vmul.f32 0.35355338, %v746_v20 }
 0x25e   :  { %v359_v23 = vpop.f32.mrb[11].mxu1  ;;  %v749_v25 = vpop.f32.mrb[15].mxu0  ;;  %v2821_v37 = vadd.f32 %v409_v31, %v226_v34  ;;  %v410_v47 = vmul.f32 0.35355338, %v2042_v21  ;;  %v2842_v53 = vadd.f32 %v799_v50, %v226_v34  ;;  %v800_v10 = vmul.f32 0.35355338, %v2080_v22 }
 0x25f   :  { %v2833_v48 = vadd.f32 %v407_v35, %v224_v40  ;;  %v408_v52 = vmul.f32 0.35355338, %v359_v23  ;;  %v2856_v12 = vadd.f32 %v797_v59, %v224_v40  ;;  %v798_v18 = vmul.f32 0.35355338, %v749_v25  ;;  %v233_v20 = vld [vmem:[%s3557_s5 + $0x68] sm:$0xff]  ;;  %v228_v31 = vld [vmem:[%s3557_s5 + $0x40] sm:$0xff] }
 0x260   :  { %v2839_v51 = vadd.f32 %v410_v47, %v227_v49  ;;  %v2864_v19 = vadd.f32 %v800_v10, %v227_v49 }
 0x261   :  { %825 = vmax.xlane.f32.xlu1 %v2809_v28  ;;  %v2848_v61 = vadd.f32 %v408_v52, %v225_v58  ;;  %v2873_v23 = vadd.f32 %v798_v18, %v225_v58 }
 0x265   :  { %831 = vmax.xlane.f32.xlu1 %v2812_v30 }
 0x269   :  { %827 = vmax.xlane.f32.xlu1 %v2815_v32 }
 0x26b   :  { %v2045_v38 = vpop.f32.mrb[12].mxu1  ;;  %v2083_v39 = vpop.f32.mrb[16].mxu0 }
 0x26c   :  { %v372_v41 = vpop.f32.mrb[13].mxu1  ;;  %v2826_v42 = vpop.f32.mrb[17].mxu0  ;;  %v413_v22 = vmul.f32 0.35355338, %v2045_v38  ;;  %v231_v38 = vld [vmem:[%s3557_s5 + $0x58] sm:$0xff] }
 0x26d   :  { %447 = vmax.xlane.f32.xlu1 %v2821_v37  ;;  %v2046_v43 = vpop.f32.mrb[14].mxu1  ;;  %v2829_v44 = vpop.f32.mrb[18].mxu0  ;;  %v411_v25 = vmul.f32 0.35355338, %v372_v41  ;;  %v803_v40 = vmul.f32 0.35355338, %v2083_v39 }
 0x26e   :  { %v375_v45 = vpop.f32.mrb[15].mxu1  ;;  %v2831_v46 = vpop.f32.mrb[19].mxu0  ;;  %v2880_v29 = vadd.f32 %v413_v22, %v230_v27  ;;  %v414_v34 = vmul.f32 0.35355338, %v2046_v43  ;;  %v229_v43 = vld [vmem:[%s3557_s5 + $0x48] sm:$0xff] }
 0x26f   :  { %v2886_v35 = vadd.f32 %v411_v25, %v228_v31  ;;  %v412_v41 = vmul.f32 0.35355338, %v375_v45  ;;  %v2895_v49 = vadd.f32 %v803_v40, %v230_v27  ;;  %v801_v50 = vmul.f32 0.35355338, %v2826_v42  ;;  %v234_v42 = vld [vmem:[%s3557_s5 + $0x70] sm:$0xff] }
 0x270   :  { %v2892_v47 = vadd.f32 %v414_v34, %v231_v38  ;;  %v804_v39 = vmul.f32 0.35355338, %v2829_v44  ;;  %v802_v45 = vmul.f32 0.35355338, %v2831_v46  ;;  %v232_v46 = vld [vmem:[%s3557_s5 + $0x60] sm:$0xff] }
 0x271   :  { %443 = vmax.xlane.f32.xlu1 %v2833_v48  ;;  %v2902_v52 = vadd.f32 %v412_v41, %v229_v43  ;;  %v2906_v58 = vadd.f32 %v801_v50, %v228_v31 }
 0x272   :  { %v2910_v59 = vadd.f32 %v804_v39, %v231_v38 }
 0x275   :  { %449 = vmax.xlane.f32.xlu1 %v2839_v51 }
 0x279   :  { %837 = vmax.xlane.f32.xlu1 %v2842_v53 }
 0x27b   :  { %v2049_v60 = vpop.f32.mrb[16].mxu1  ;;  %v2087_v62 = vpop.f32.mrb[20].mxu0 }
 0x27c   :  { %v388_v63 = vpop.f32.mrb[17].mxu1  ;;  %v2850_v0 = vpop.f32.mrb[21].mxu0 }
 0x27d   :  { %445 = vmax.xlane.f32.xlu1 %v2848_v61  ;;  %v2050_v1 = vpop.f32.mrb[18].mxu1  ;;  %v2088_v2 = vpop.f32.mrb[22].mxu0 }
 0x27e   :  { %v418_v4 = vmul.f32 0.35355338, %v2050_v1  ;;  %v808_v5 = vmul.f32 0.35355338, %v2088_v2  ;;  %v781_v6 = vpop.f32.mrb[23].mxu0  ;;  %v391_v8 = vpop.f32.mrb[19].mxu1  ;;  %v2916_v2 = vadd.f32 %v802_v45, %v229_v43 }
 0x27f   :  { %v806_v15 = vmul.f32 0.35355338, %v781_v6  ;;  %v417_v1 = vmul.f32 0.35355338, %v2049_v60 }
 0x280   :  { %v2858_v13 = vadd.f32 %v418_v4, %v235_v3  ;;  %v2862_v17 = vadd.f32 %v808_v5, %v235_v3  ;;  %v415_v3 = vmul.f32 0.35355338, %v388_v63  ;;  %v807_v4 = vmul.f32 0.35355338, %v2087_v62  ;;  %v50_v62 = vld [vmem:[%s3556_s2 + $0x10] sm:$0xff] }
 0x281   :  { %833 = vmax.xlane.f32.xlu1 %v2856_v12  ;;  %v2871_v21 = vadd.f32 %v806_v15, %v233_v20  ;;  %v2919_v44 = vadd.f32 %v417_v1, %v234_v42  ;;  %v416_v5 = vmul.f32 0.35355338, %v391_v8  ;;  %v805_v63 = vmul.f32 0.35355338, %v2850_v0 }
 0x282   :  { %465 = vmax.xlane.f32.xlu0 %v2858_v13  ;;  %v2925_v60 = vadd.f32 %v415_v3, %v232_v46  ;;  %v2928_v6 = vadd.f32 %v807_v4, %v234_v42 }
 0x283   :  { %v2932_v10 = vadd.f32 %v416_v5, %v233_v20  ;;  %v2935_v15 = vadd.f32 %v805_v63, %v232_v46 }
 0x285   :  { %839 = vmax.xlane.f32.xlu1 %v2864_v19 }
 0x286   :  { %855 = vmax.xlane.f32.xlu0 %v2862_v17 }
 0x289   :  { %835 = vmax.xlane.f32.xlu1 %v2873_v23 }
 0x28a   :  { %851 = vmax.xlane.f32.xlu0 %v2871_v21 }
 0x28d   :  { %455 = vmax.xlane.f32.xlu1 %v2880_v29 }
 0x291   :  { %451 = vmax.xlane.f32.xlu1 %v2886_v35 }
 0x295   :  { %457 = vmax.xlane.f32.xlu1 %v2892_v47 }
 0x299   :  { %845 = vmax.xlane.f32.xlu1 %v2895_v49 }
 0x29d   :  { %453 = vmax.xlane.f32.xlu1 %v2902_v52 }
 0x2a1   :  { %841 = vmax.xlane.f32.xlu1 %v2906_v58 }
 0x2a5   :  { %847 = vmax.xlane.f32.xlu1 %v2910_v59 }
 0x2a9   :  { %843 = vmax.xlane.f32.xlu1 %v2916_v2 }
 0x2ad   :  { %463 = vmax.xlane.f32.xlu1 %v2919_v44 }
 0x2b1   :  { %459 = vmax.xlane.f32.xlu1 %v2925_v60 }
 0x2b5   :  { %853 = vmax.xlane.f32.xlu1 %v2928_v6 }
 0x2b9   :  { %461 = vmax.xlane.f32.xlu1 %v2932_v10 }
 0x2bd   :  { %849 = vmax.xlane.f32.xlu1 %v2935_v15 }
 0x2ce   :  { %72 = vperm.xlu1 %2205, %v50_v62  }
 0x2de   :  { %v436_v8 = vpop.xlane.xlu1 %435 }
 0x2df   :  { %v467_v18 = vsub.f32 %v2788_v7, %v436_v8 }
 0x2e0   :  { %v438_v0 = vpop.xlane.xlu0 %437 }
 0x2e1   :  { %v483_v25 = vmul.f32 1.442695, %v467_v18  ;;  %v468_v31 = vsub.f32 %v2794_v9, %v438_v0 }
 0x2e2   :  { %v440_v22 = vpop.xlane.xlu1 %439 }
 0x2e3   :  { %v469_v27 = vsub.f32 %v2797_v11, %v440_v22  ;;  %v485_v41 = vmul.f32 1.442695, %v468_v31 }
 0x2e5   :  { %v487_v20 = vmul.f32 1.442695, %v469_v27 }
 0x2e6   :  { %v442_v34 = vpop.xlane.xlu1 %441 }
 0x2e7   :  { %2370 = vpow2.f32 %v487_v20  ;;  %v470_v38 = vsub.f32 %v2803_v14, %v442_v34 }
 0x2e8   :  { %2372 = vpow2.f32 %v483_v25 }
 0x2e9   :  { %v489_v40 = vmul.f32 1.442695, %v470_v38 }
 0x2ea   :  { %v830_v43 = vpop.xlane.xlu1 %829 }
 0x2eb   :  { %2374 = vpow2.f32 %v489_v40  ;;  %v859_v50 = vsub.f32 %v2806_v16, %v830_v43 }
 0x2ec   :  { %2376 = vpow2.f32 %v485_v41 }
 0x2ed   :  { %v877_v7 = vmul.f32 1.442695, %v859_v50 }
 0x2ee   :  { %v826_v39 = vpop.xlane.xlu1 %825 }
 0x2ef   :  { %2378 = vpow2.f32 %v877_v7  ;;  %v857_v11 = vsub.f32 %v2809_v28, %v826_v39 }
 0x2f1   :  { %v2947_v45 = vpop.eup %2370  ;;  %v873_v9 = vmul.f32 1.442695, %v857_v11 }
 0x2f2   :  { %v832_v1 = vpop.xlane.xlu1 %831  ;;  %519 = vadd.xlane.f32.xlu1 %v2947_v45  ;;  %v2951_v42 = vpop.eup %2372 }
 0x2f3   :  { %2380 = vpow2.f32 %v873_v9  ;;  %v860_v14 = vsub.f32 %v2812_v30, %v832_v1 }
 0x2f5   :  { %v2953_v3 = vpop.eup %2374  ;;  %v879_v16 = vmul.f32 1.442695, %v860_v14 }
 0x2f6   :  { %v828_v46 = vpop.xlane.xlu1 %827  ;;  %521 = vadd.xlane.f32.xlu0 %v2953_v3  ;;  %515 = vadd.xlane.f32.xlu1 %v2951_v42  ;;  %v2958_v4 = vpop.eup %2376 }
 0x2f7   :  { %2382 = vpow2.f32 %v879_v16  ;;  %v858_v28 = vsub.f32 %v2815_v32, %v828_v46  ;;  %v2643_v16 = vmov 0.0  }
 0x2f8   :  { %2051 = vmatprep.subr.bf16.mxu1 %v2643_v16  ;;  %2089 = vmatprep.subr.bf16.mxu0 %v2643_v16 }
 0x2f9   :  { %v2960_v5 = vpop.eup %2378  ;;  %v875_v63 = vmul.f32 1.442695, %v858_v28  ;;  %2067 = vmatprep.mubr.msk.bf16.mxu1 %vm2644_vm3, %v2643_v16  ;;  %2105 = vmatprep.mubr.msk.bf16.mxu0 %vm2644_vm3, %v2643_v16 }
 0x2fa   :  { %v448_v62 = vpop.xlane.xlu1 %447  ;;  %517 = vadd.xlane.f32.xlu0 %v2958_v4  ;;  %909 = vadd.xlane.f32.xlu1 %v2960_v5 }
 0x2fb   :  { %2384 = vpow2.f32 %v875_v63  ;;  %v473_v30 = vsub.f32 %v2821_v37, %v448_v62 }
 0x2fd   :  { %v2965_v8 = vpop.eup %2380  ;;  %v495_v18 = vmul.f32 1.442695, %v473_v30 }
 0x2fe   :  { %v444_v22 = vpop.xlane.xlu1 %443  ;;  %905 = vadd.xlane.f32.xlu1 %v2965_v8 }
 0x2ff   :  { %2386 = vpow2.f32 %v495_v18  ;;  %v471_v32 = vsub.f32 %v2833_v48, %v444_v22 }
 0x301   :  { %v2969_v0 = vpop.eup %2382  ;;  %v491_v27 = vmul.f32 1.442695, %v471_v32 }
 0x302   :  { %v450_v20 = vpop.xlane.xlu1 %449  ;;  %911 = vadd.xlane.f32.xlu0 %v2969_v0 }
 0x303   :  { %2388 = vpow2.f32 %v491_v27  ;;  %v474_v25 = vsub.f32 %v2839_v51, %v450_v20 }
 0x305   :  { %v2973_v31 = vpop.eup %2384  ;;  %v497_v37 = vmul.f32 1.442695, %v474_v25 }
 0x306   :  { %v838_v34 = vpop.xlane.xlu1 %837  ;;  %907 = vadd.xlane.f32.xlu0 %v2973_v31 }
 0x307   :  { %2390 = vpow2.f32 %v497_v37  ;;  %v863_v38 = vsub.f32 %v2842_v53, %v838_v34 }
 0x309   :  { %v2977_v40 = vpop.eup %2386  ;;  %v885_v48 = vmul.f32 1.442695, %v863_v38 }
 0x30a   :  { %v446_v41 = vpop.xlane.xlu1 %445  ;;  %527 = vadd.xlane.f32.xlu1 %v2977_v40 }
 0x30b   :  { %2392 = vpow2.f32 %v885_v48  ;;  %v472_v43 = vsub.f32 %v2848_v61, %v446_v41 }
 0x30d   :  { %v2981_v50 = vpop.eup %2388  ;;  %v493_v51 = vmul.f32 1.442695, %v472_v43 }
 0x30e   :  { %v834_v7 = vpop.xlane.xlu1 %833  ;;  %523 = vadd.xlane.f32.xlu1 %v2981_v50 }
 0x30f   :  { %2394 = vpow2.f32 %v493_v51  ;;  %v861_v39 = vsub.f32 %v2856_v12, %v834_v7 }
 0x311   :  { %v2985_v11 = vpop.eup %2390  ;;  %v881_v53 = vmul.f32 1.442695, %v861_v39 }
 0x312   :  { %v840_v9 = vpop.xlane.xlu1 %839  ;;  %529 = vadd.xlane.f32.xlu0 %v2985_v11 }
 0x313   :  { %2396 = vpow2.f32 %v881_v53  ;;  %v864_v1 = vsub.f32 %v2864_v19, %v840_v9 }
 0x315   :  { %v2989_v14 = vpop.eup %2392  ;;  %v887_v61 = vmul.f32 1.442695, %v864_v1 }
 0x316   :  { %v836_v46 = vpop.xlane.xlu1 %835  ;;  %917 = vadd.xlane.f32.xlu1 %v2989_v14 }
 0x317   :  { %2398 = vpow2.f32 %v887_v61  ;;  %v862_v12 = vsub.f32 %v2873_v23, %v836_v46 }
 0x319   :  { %v2995_v28 = vpop.eup %2394  ;;  %v883_v63 = vmul.f32 1.442695, %v862_v12 }
 0x31a   :  { %v456_v62 = vpop.xlane.xlu1 %455  ;;  %525 = vadd.xlane.f32.xlu0 %v2995_v28 }
 0x31b   :  { %2400 = vpow2.f32 %v883_v63  ;;  %v477_v19 = vsub.f32 %v2880_v29, %v456_v62 }
 0x31d   :  { %v2999_v30 = vpop.eup %2396  ;;  %v503_v18 = vmul.f32 1.442695, %v477_v19 }
 0x31e   :  { %v452_v22 = vpop.xlane.xlu1 %451  ;;  %913 = vadd.xlane.f32.xlu1 %v2999_v30 }
 0x31f   :  { %2402 = vpow2.f32 %v503_v18  ;;  %v475_v32 = vsub.f32 %v2886_v35, %v452_v22 }
 0x321   :  { %v3003_v27 = vpop.eup %2398  ;;  %v499_v23 = vmul.f32 1.442695, %v475_v32 }
 0x322   :  { %v458_v20 = vpop.xlane.xlu1 %457  ;;  %919 = vadd.xlane.f32.xlu0 %v3003_v27 }
 0x323   :  { %2404 = vpow2.f32 %v499_v23  ;;  %v478_v25 = vsub.f32 %v2892_v47, %v458_v20 }
 0x325   :  { %v3007_v37 = vpop.eup %2400  ;;  %v505_v29 = vmul.f32 1.442695, %v478_v25 }
 0x326   :  { %v846_v34 = vpop.xlane.xlu1 %845  ;;  %915 = vadd.xlane.f32.xlu0 %v3007_v37 }
 0x327   :  { %2406 = vpow2.f32 %v505_v29  ;;  %v867_v38 = vsub.f32 %v2895_v49, %v846_v34 }
 0x329   :  { %v3011_v48 = vpop.eup %2402  ;;  %v893_v35 = vmul.f32 1.442695, %v867_v38 }
 0x32a   :  { %v454_v41 = vpop.xlane.xlu1 %453  ;;  %535 = vadd.xlane.f32.xlu1 %v3011_v48 }
 0x32b   :  { %2408 = vpow2.f32 %v893_v35  ;;  %v476_v43 = vsub.f32 %v2902_v52, %v454_v41 }
 0x32d   :  { %v3015_v51 = vpop.eup %2404  ;;  %v501_v47 = vmul.f32 1.442695, %v476_v43 }
 0x32e   :  { %v842_v7 = vpop.xlane.xlu1 %841  ;;  %531 = vadd.xlane.f32.xlu1 %v3015_v51 }
 0x32f   :  { %2410 = vpow2.f32 %v501_v47  ;;  %v865_v39 = vsub.f32 %v2906_v58, %v842_v7  ;;  %v51_v7 = vld [vmem:[%s3556_s2 + $0x18] sm:$0xff] }
 0x331   :  { %v3019_v53 = vpop.eup %2406  ;;  %v889_v49 = vmul.f32 1.442695, %v865_v39 }
 0x332   :  { %v848_v9 = vpop.xlane.xlu1 %847  ;;  %537 = vadd.xlane.f32.xlu0 %v3019_v53 }
 0x333   :  { %2412 = vpow2.f32 %v889_v49  ;;  %v868_v1 = vsub.f32 %v2910_v59, %v848_v9  ;;  %v56_v9 = vld [vmem:[%s3556_s2 + $0x40] sm:$0xff] }
 0x335   :  { %v3023_v61 = vpop.eup %2408  ;;  %v895_v52 = vmul.f32 1.442695, %v868_v1 }
 0x336   :  { %v844_v46 = vpop.xlane.xlu1 %843  ;;  %925 = vadd.xlane.f32.xlu1 %v3023_v61 }
 0x337   :  { %2414 = vpow2.f32 %v895_v52  ;;  %v866_v12 = vsub.f32 %v2916_v2, %v844_v46  ;;  %v54_v46 = vld [vmem:[%s3556_s2 + $0x30] sm:$0xff] }
 0x339   :  { %v3027_v63 = vpop.eup %2410  ;;  %v891_v58 = vmul.f32 1.442695, %v866_v12 }
 0x33a   :  { %v464_v62 = vpop.xlane.xlu1 %463  ;;  %533 = vadd.xlane.f32.xlu0 %v3027_v63 }
 0x33b   :  { %2416 = vpow2.f32 %v891_v58  ;;  %v481_v19 = vsub.f32 %v2919_v44, %v464_v62 }
 0x33d   :  { %v3031_v18 = vpop.eup %2412  ;;  %v511_v59 = vmul.f32 1.442695, %v481_v19 }
 0x33e   :  { %v460_v22 = vpop.xlane.xlu1 %459  ;;  %921 = vadd.xlane.f32.xlu1 %v3031_v18 }
 0x33f   :  { %2418 = vpow2.f32 %v511_v59  ;;  %v479_v32 = vsub.f32 %v2925_v60, %v460_v22 }
 0x341   :  { %v3035_v23 = vpop.eup %2414  ;;  %v507_v2 = vmul.f32 1.442695, %v479_v32 }
 0x342   :  { %v854_v20 = vpop.xlane.xlu1 %853  ;;  %927 = vadd.xlane.f32.xlu0 %v3035_v23 }
 0x343   :  { %2420 = vpow2.f32 %v507_v2  ;;  %v871_v25 = vsub.f32 %v2928_v6, %v854_v20 }
 0x345   :  { %v3039_v29 = vpop.eup %2416  ;;  %v901_v44 = vmul.f32 1.442695, %v871_v25 }
 0x346   :  { %923 = vadd.xlane.f32.xlu0 %v3039_v29  ;;  %v462_v34 = vpop.xlane.xlu1 %461 }
 0x347   :  { %2422 = vpow2.f32 %v901_v44  ;;  %v480_v52 = vsub.f32 %v2932_v10, %v462_v34 }
 0x349   :  { %v3042_v38 = vpop.eup %2418  ;;  %v509_v62 = vmul.f32 1.442695, %v480_v52 }
 0x34a   :  { %543 = vadd.xlane.f32.xlu1 %v3042_v38  ;;  %v850_v60 = vpop.xlane.xlu1 %849 }
 0x34b   :  { %v869_v35 = vsub.f32 %v2935_v15, %v850_v60  ;;  %v466_v15 = vpop.xlane.xlu0 %465 }
 0x34c   :  { %v482_v49 = vsub.f32 %v2858_v13, %v466_v15  ;;  %v55_v13 = vld [vmem:[%s3556_s2 + $0x38] sm:$0xff] }
 0x34d   :  { %v3046_v41 = vpop.eup %2420  ;;  %v897_v43 = vmul.f32 1.442695, %v869_v35 }
 0x34e   :  { %539 = vadd.xlane.f32.xlu1 %v3046_v41  ;;  %v513_v1 = vmul.f32 1.442695, %v482_v49  ;;  %v3073_v32 = vpop.permute.xlu1 %72 }
 0x34f   :  { %2424 = vpow2.f32 %v897_v43  ;;  %v856_v39 = vpop.xlane.xlu0 %855 }
 0x350   :  { %2426 = vpow2.f32 %v513_v1  ;;  %v872_v19 = vsub.f32 %v2862_v17, %v856_v39 }
 0x351   :  { %v3049_v6 = vpop.eup %2422  ;;  %2428 = vpow2.f32 %v509_v62 }
 0x352   :  { %933 = vadd.xlane.f32.xlu1 %v3049_v6  ;;  %v903_v10 = vmul.f32 1.442695, %v872_v19 }
 0x353   :  { %v852_v12 = vpop.xlane.xlu0 %851 }
 0x354   :  { %v870_v58 = vsub.f32 %v2871_v21, %v852_v12 }
 0x356   :  { %v899_v59 = vmul.f32 1.442695, %v870_v58  ;;  %v57_v58 = vld [vmem:[%s3556_s2 + $0x48] sm:$0xff] }
 0x358   :  { %2430 = vpow2.f32 %v899_v59 }
 0x359   :  { %v3052_v47 = vpop.eup %2424  ;;  %2432 = vpow2.f32 %v903_v10 }
 0x35a   :  { %929 = vadd.xlane.f32.xlu1 %v3052_v47  ;;  %v3071_v22 = vpop.eup %2426 }
 0x35b   :  { %v3076_v21 = vpop.eup %2428 }
 0x35c   :  { %77 = vperm.xlu0 %2204, %v51_v7  }
 0x362   :  { %v3079_v20 = vpop.eup %2430 }
 0x363   :  { %v3082_v44 = vpop.eup %2432 }
 0x36b   :  { %102 = vperm.xlu1 %2205, %v56_v9  }
 0x36f   :  { %92 = vperm.xlu1 %2205, %v54_v46  }
 0x373   :  { %97 = vperm.xlu1 %2205, %v55_v13  }
 0x37b   :  { %545 = vadd.xlane.f32.xlu0 %v3071_v22 }
 0x37f   :  { %541 = vadd.xlane.f32.xlu0 %v3076_v21  ;;  %v520_v2 = vpop.xlane.xlu1 %519 }
 0x383   :  { %v522_v25 = vpop.xlane.xlu0 %521  ;;  %931 = vadd.xlane.f32.xlu0 %v3079_v20  ;;  %v516_v17 = vpop.xlane.xlu1 %515 }
 0x384   :  { %2434 = vrcp.f32 %v516_v17 }
 0x387   :  { %v518_v34 = vpop.xlane.xlu0 %517  ;;  %935 = vadd.xlane.f32.xlu0 %v3082_v44  ;;  %v910_v60 = vpop.xlane.xlu1 %909 }
 0x388   :  { %2436 = vrcp.f32 %v518_v34 }
 0x389   :  { %2438 = vrcp.f32 %v522_v25 }
 0x38a   :  { %2440 = vrcp.f32 %v520_v2 }
 0x38b   :  { %v906_v35 = vpop.xlane.xlu1 %905 }
 0x38c   :  { %2442 = vrcp.f32 %v906_v35 }
 0x38e   :  { %v2435_v7 = vpop.eup %2434 }
 0x38f   :  { %v912_v43 = vpop.xlane.xlu0 %911  ;;  %v548_v49 = vmul.f32 %v2435_v7, %v2951_v42 }
 0x392   :  { %v2437_v15 = vpop.eup %2436 }
 0x393   :  { %v908_v39 = vpop.xlane.xlu0 %907  ;;  %v550_v9 = vmul.f32 %v2437_v15, %v2958_v4  ;;  %v2439_v52 = vpop.eup %2438 }
 0x394   :  { %2444 = vrcp.f32 %v908_v39  ;;  %v2441_v46 = vpop.eup %2440  ;;  %v554_v12 = vmul.f32 %v2439_v52, %v2953_v3 }
 0x395   :  { %v580_v1 = vpack.c.bf16 %v550_v9, %v548_v49  ;;  %2446 = vrcp.f32 %v912_v43  ;;  %v552_v62 = vmul.f32 %v2441_v46, %v2947_v45 }
 0x396   :  { %2448 = vrcp.f32 %v910_v60  ;;  %v2443_v42 = vpop.eup %2442 }
 0x397   :  { %2052 = vmatpush3.bf16.xpose.msra.mxu1 %v580_v1  ;;  %v528_v13 = vpop.xlane.xlu1 %527  ;;  %v581_v4 = vpack.c.bf16 %v554_v12, %v552_v62  ;;  %v938_v59 = vmul.f32 %v2443_v42, %v2965_v8 }
 0x398   :  { %2053 = vmatprep.subr.bf16.mxu1 %v2643_v16 }
 0x39b   :  { %v524_v25 = vpop.xlane.xlu1 %523 }
 0x39c   :  { %2450 = vrcp.f32 %v524_v25 }
 0x39d   :  { %107 = vperm.xlu0 %2204, %v57_v58  }
 0x39e   :  { %v2445_v19 = vpop.eup %2444 }
 0x39f   :  { %2054 = vmatpush3.bf16.xpose.msra.mxu1 %v581_v4  ;;  %v940_v10 = vmul.f32 %v2445_v19, %v2973_v31  ;;  %v2447_v2 = vpop.eup %2446  ;;  %v530_v17 = vpop.xlane.xlu0 %529 }
 0x3a0   :  { %2055 = vmatprep.subr.bf16.mxu1 %v2643_v16  ;;  %v2449_v34 = vpop.eup %2448  ;;  %v944_v45 = vmul.f32 %v2447_v2, %v2969_v0 }
 0x3a1   :  { %v970_v3 = vpack.c.bf16 %v940_v10, %v938_v59  ;;  %v942_v35 = vmul.f32 %v2449_v34, %v2960_v5 }
 0x3a3   :  { %2090 = vmatpush3.bf16.xpose.msra.mxu0 %v970_v3  ;;  %v971_v8 = vpack.c.bf16 %v944_v45, %v942_v35  ;;  %v918_v31 = vpop.xlane.xlu1 %917 }
 0x3a4   :  { %2091 = vmatprep.subr.bf16.mxu0 %v2643_v16 }
 0x3a6   :  { %v2451_v7 = vpop.eup %2450 }
 0x3a7   :  { %v526_v60 = vpop.xlane.xlu0 %525  ;;  %v556_v39 = vmul.f32 %v2451_v7, %v2981_v50 }
 0x3a8   :  { %2452 = vrcp.f32 %v526_v60 }
 0x3a9   :  { %2454 = vrcp.f32 %v530_v17 }
 0x3aa   :  { %2456 = vrcp.f32 %v528_v13 }
 0x3ab   :  { %2092 = vmatpush3.bf16.xpose.msra.mxu0 %v971_v8  ;;  %v914_v0 = vpop.xlane.xlu1 %913 }
 0x3ac   :  { %2093 = vmatprep.subr.bf16.mxu0 %v2643_v16  ;;  %2458 = vrcp.f32 %v914_v0 }
 0x3af   :  { %v920_v43 = vpop.xlane.xlu0 %919 }
 0x3b2   :  { %v2453_v15 = vpop.eup %2452 }
 0x3b3   :  { %v916_v5 = vpop.xlane.xlu0 %915  ;;  %v558_v49 = vmul.f32 %v2453_v15, %v2995_v28  ;;  %v2455_v1 = vpop.eup %2454 }
 0x3b4   :  { %2460 = vrcp.f32 %v916_v5  ;;  %v2457_v52 = vpop.eup %2456  ;;  %v562_v46 = vmul.f32 %v2455_v1, %v2985_v11 }
 0x3b5   :  { %v582_v9 = vpack.c.bf16 %v558_v49, %v556_v39  ;;  %2462 = vrcp.f32 %v920_v43  ;;  %v560_v12 = vmul.f32 %v2457_v52, %v2977_v40 }
 0x3b6   :  { %2464 = vrcp.f32 %v918_v31  ;;  %v2459_v58 = vpop.eup %2458 }
 0x3b7   :  { %2056 = vmatpush3.bf16.xpose.msra.mxu1 %v582_v9  ;;  %v536_v62 = vpop.xlane.xlu1 %535  ;;  %v583_v42 = vpack.c.bf16 %v562_v46, %v560_v12  ;;  %v946_v50 = vmul.f32 %v2459_v58, %v2999_v30 }
 0x3b8   :  { %2057 = vmatprep.subr.bf16.mxu1 %v2643_v16 }
 0x3bb   :  { %v532_v59 = vpop.xlane.xlu1 %531 }
 0x3bc   :  { %2466 = vrcp.f32 %v532_v59 }
 0x3be   :  { %v2461_v13 = vpop.eup %2460 }
 0x3bf   :  { %2058 = vmatpush3.bf16.xpose.msra.mxu1 %v583_v42  ;;  %v948_v28 = vmul.f32 %v2461_v13, %v3007_v37  ;;  %v2463_v19 = vpop.eup %2462  ;;  %v538_v10 = vpop.xlane.xlu0 %537 }
 0x3c0   :  { %2059 = vmatprep.subr.bf16.mxu1 %v2643_v16  ;;  %v2465_v11 = vpop.eup %2464  ;;  %v952_v40 = vmul.f32 %v2463_v19, %v3003_v27 }
 0x3c1   :  { %v972_v4 = vpack.c.bf16 %v948_v28, %v946_v50  ;;  %v950_v2 = vmul.f32 %v2465_v11, %v2989_v14 }
 0x3c3   :  { %2094 = vmatpush3.bf16.xpose.msra.mxu0 %v972_v4  ;;  %v973_v30 = vpack.c.bf16 %v952_v40, %v950_v2  ;;  %v926_v25 = vpop.xlane.xlu1 %925 }
 0x3c4   :  { %2095 = vmatprep.subr.bf16.mxu0 %v2643_v16 }
 0x3c6   :  { %v2467_v34 = vpop.eup %2466 }
 0x3c7   :  { %v534_v3 = vpop.xlane.xlu0 %533  ;;  %v564_v27 = vmul.f32 %v2467_v34, %v3015_v51  ;;  %v182_v51 = vadd.f32 %v2732_v24, %v3073_v32 }
 0x3c8   :  { %2468 = vrcp.f32 %v534_v3 }
 0x3c9   :  { %2470 = vrcp.f32 %v538_v10 }
 0x3ca   :  { %2472 = vrcp.f32 %v536_v62 }
 0x3cb   :  { %2096 = vmatpush3.bf16.xpose.msra.mxu0 %v973_v30  ;;  %v922_v37 = vpop.xlane.xlu1 %921 }
 0x3cc   :  { %2097 = vmatprep.subr.bf16.mxu0 %v2643_v16  ;;  %2474 = vrcp.f32 %v922_v37 }
 0x3cf   :  { %v928_v17 = vpop.xlane.xlu0 %927 }
 0x3d2   :  { %v2469_v45 = vpop.eup %2468 }
 0x3d3   :  { %v924_v60 = vpop.xlane.xlu0 %923  ;;  %v566_v35 = vmul.f32 %v2469_v45, %v3027_v63  ;;  %v2471_v8 = vpop.eup %2470 }
 0x3d4   :  { %2476 = vrcp.f32 %v924_v60  ;;  %v2473_v31 = vpop.eup %2472  ;;  %v570_v0 = vmul.f32 %v2471_v8, %v3019_v53 }
 0x3d5   :  { %v584_v14 = vpack.c.bf16 %v566_v35, %v564_v27  ;;  %2478 = vrcp.f32 %v928_v17  ;;  %v568_v7 = vmul.f32 %v2473_v31, %v3011_v48 }
 0x3d6   :  { %2480 = vrcp.f32 %v926_v25  ;;  %v2475_v15 = vpop.eup %2474 }
 0x3d7   :  { %2060 = vmatpush3.bf16.xpose.msra.mxu1 %v584_v14  ;;  %v585_v5 = vpack.c.bf16 %v570_v0, %v568_v7  ;;  %v954_v9 = vmul.f32 %v2475_v15, %v3031_v18  ;;  %v544_v18 = vpop.xlane.xlu1 %543 }
 0x3d8   :  { %2061 = vmatprep.subr.bf16.mxu1 %v2643_v16 }
 0x3db   :  { %v78_v43 = vpop.permute.xlu0 %77  ;;  %v540_v46 = vpop.xlane.xlu1 %539 }
 0x3dc   :  { %v185_v63 = vadd.f32 %v2734_v26, %v78_v43  ;;  %2482 = vrcp.f32 %v540_v46 }
 0x3de   :  { %v2477_v39 = vpop.eup %2476  ;;  %v2288_v49 = vpack.i.bf16 %v185_v63, %v182_v51 }
 0x3df   :  { %2062 = vmatpush3.bf16.xpose.msra.mxu1 %v585_v5  ;;  %v956_v1 = vmul.f32 %v2477_v39, %v3039_v29  ;;  %v2479_v52 = vpop.eup %2478  ;;  %v934_v29 = vpop.xlane.xlu1 %933 }
 0x3e0   :  { %2289 = vxpose.xlu0.b32.start.end [1/1] (short) %v2288_v49, 128  ;;  %2063 = vmatprep.subr.bf16.mxu1 %v2643_v16  ;;  %v2481_v48 = vpop.eup %2480  ;;  %v960_v24 = vmul.f32 %v2479_v52, %v3035_v23 }
 0x3e1   :  { %v974_v53 = vpack.c.bf16 %v956_v1, %v954_v9  ;;  %v958_v26 = vmul.f32 %v2481_v48, %v3023_v61 }
 0x3e3   :  { %2098 = vmatpush3.bf16.xpose.msra.mxu0 %v974_v53  ;;  %v975_v32 = vpack.c.bf16 %v960_v24, %v958_v26 }
 0x3e4   :  { %2099 = vmatprep.subr.bf16.mxu0 %v2643_v16 }
 0x3e6   :  { %v2483_v61 = vpop.eup %2482 }
 0x3e7   :  { %v930_v58 = vpop.xlane.xlu1 %929  ;;  %v572_v28 = vmul.f32 %v2483_v61, %v3046_v41 }
 0x3eb   :  { %2100 = vmatpush3.bf16.xpose.msra.mxu0 %v975_v32  ;;  %v103_v23 = vpop.permute.xlu1 %102 }
 0x3ec   :  { %2101 = vmatprep.subr.bf16.mxu0 %v2643_v16 }
 0x3ef   :  { %v93_v10 = vpop.permute.xlu1 %92 }
 0x3f0   :  { %v198_v41 = vadd.f32 %v2736_v33, %v93_v10 }
 0x408   :  { %v546_v12 = vpop.xlane.xlu0 %545 }
 0x40c   :  { %v542_v62 = vpop.xlane.xlu0 %541 }
 0x40d   :  { %2484 = vrcp.f32 %v542_v62 }
 0x40e   :  { %2486 = vrcp.f32 %v930_v58 }
 0x40f   :  { %2488 = vrcp.f32 %v546_v12 }
 0x410   :  { %v932_v42 = vpop.xlane.xlu0 %931 }
 0x411   :  { %2490 = vrcp.f32 %v932_v42 }
 0x412   :  { %2492 = vrcp.f32 %v544_v18 }
 0x414   :  { %v936_v13 = vpop.xlane.xlu0 %935 }
 0x415   :  { %2494 = vrcp.f32 %v936_v13 }
 0x416   :  { %2496 = vrcp.f32 %v934_v29 }
 0x417   :  { %v2485_v50 = vpop.eup %2484 }
 0x418   :  { %v574_v4 = vmul.f32 %v2485_v50, %v3076_v21  ;;  %v2487_v19 = vpop.eup %2486  ;;  %v98_v21 = vpop.permute.xlu1 %97 }
 0x419   :  { %v2489_v59 = vpop.eup %2488  ;;  %v962_v3 = vmul.f32 %v2487_v19, %v3052_v47  ;;  %v201_v27 = vadd.f32 %v2738_v36, %v98_v21 }
 0x41a   :  { %v586_v11 = vpack.c.bf16 %v574_v4, %v572_v28  ;;  %v578_v37 = vmul.f32 %v2489_v59, %v3071_v22  ;;  %v206_v22 = vadd.f32 %v2776_v55, %v103_v23 }
 0x41b   :  { %v2491_v40 = vpop.eup %2490  ;;  %v1448_v8 = vpack.c.bf16 %v201_v27, %v201_v27 }
 0x41c   :  { %2064 = vmatpush3.bf16.xpose.msra.mxu1 %v586_v11  ;;  %v964_v2 = vmul.f32 %v2491_v40, %v3079_v20  ;;  %v2493_v30 = vpop.eup %2492  ;;  %v1058_v20 = vpack.c.bf16 %v198_v41, %v198_v41  ;;  %v108_v33 = vpop.permute.xlu0 %107 }
 0x41d   :  { %2065 = vmatprep.subr.bf16.mxu1 %v2643_v16  ;;  %v576_v34 = vmul.f32 %v2493_v30, %v3042_v38  ;;  %v579_v38 = vpack.c.bf16 %v206_v22, %v206_v22  ;;  %v209_v31 = vadd.f32 %v2780_v57, %v108_v33  ;;  %v1474_v55 = vsel %vm302_vm1, %v1448_v8, 0 }
 0x41e   :  { %v976_v25 = vpack.c.bf16 %v964_v2, %v962_v3 }
 0x41f   :  { %v2495_v17 = vpop.eup %2494  ;;  %v587_v60 = vpack.c.bf16 %v578_v37, %v576_v34  ;;  %v969_v36 = vpack.c.bf16 %v209_v31, %v209_v31 }
 0x420   :  { %2102 = vmatpush3.bf16.xpose.msra.mxu0 %v976_v25  ;;  %v2497_v45 = vpop.eup %2496  ;;  %v968_v47 = vmul.f32 %v2495_v17, %v3082_v44  ;;  %v1084_v44 = vsel %vm302_vm1, %v1058_v20, 0 }
 0x421   :  { %2103 = vmatprep.subr.bf16.mxu0 %v2643_v16  ;;  %v966_v35 = vmul.f32 %v2497_v45, %v3049_v6 }
 0x423   :  { %v977_v14 = vpack.c.bf16 %v968_v47, %v966_v35 }
 0x424   :  { %2066 = vmatpush3.bf16.xpose.msra.mxu1 %v587_v60 }
 0x425   :  { %2199 = vmatprep.subr.msk.bf16.mxu1 %vm302_vm1, %v1058_v20 }
 0x428   :  { %2104 = vmatpush3.bf16.xpose.msra.mxu0 %v977_v14 }
 0x429   :  { %2200 = vmatprep.subr.msk.bf16.mxu0 %vm302_vm1, %v1448_v8 }
 0x42b   :  { %2068 = vmatmul.mubr.bf16.vlgmr.msra.gmra.mrb[20].mxu1 %v579_v38 }
 0x42c   :  { %2110 = vmatpush3.bf16.msra.mxu1 %v1084_v44 }
 0x42d   :  { %2127 = vmatprep.subr.bf16.mxu1 %v2643_v16 }
 0x42f   :  { %2106 = vmatmul.mubr.bf16.vlgmr.msra.gmra.mrb[24].mxu0 %v969_v36 }
 0x430   :  { %2148 = vmatpush3.bf16.msra.mxu0 %v1474_v55 }
 0x431   :  { %2165 = vmatprep.subr.bf16.mxu0 %v2643_v16 }
 0x460   :  { %v2290_v6 = vpop.trf.xlu0 }
 0x461   :  { %v2294_v0 = vunpack.i.h.bf16 %v2290_v6  ;;  %v2291_v43 = vunpack.i.l.bf16 %v2290_v6 }
 0x464   :  { %v2295_v7 = vpop.trf.xlu0 }
 0x465   :  { %v2299_v57 = vunpack.i.h.bf16 %v2295_v7  ;;  %v2296_v15 = vunpack.i.l.bf16 %v2295_v7 }
 0x467   :  { %v1050_v51 = vpack.c.bf16 %v2296_v15, %v2291_v43  ;;  %v1440_v63 = vpack.c.bf16 %v2299_v57, %v2294_v0 }
 0x468   :  { %v2300_v5 = vpop.trf.xlu0 }
 0x469   :  { %2111 = vmatprep.mubr.msk.bf16.mxu1 %vm277_vm2, %v1050_v51  ;;  %2149 = vmatprep.mubr.msk.bf16.mxu0 %vm277_vm2, %v1440_v63  ;;  %v2304_v39 = vunpack.i.h.bf16 %v2300_v5  ;;  %v2301_v49 = vunpack.i.l.bf16 %v2300_v5 }
 0x46c   :  { %v2305_v9 = vpop.trf.xlu0 }
 0x46d   :  { %v2309_v1 = vunpack.i.h.bf16 %v2305_v9  ;;  %v2306_v53 = vunpack.i.l.bf16 %v2305_v9 }
 0x46f   :  { %v1051_v52 = vpack.c.bf16 %v2306_v53, %v2301_v49  ;;  %v1441_v48 = vpack.c.bf16 %v2309_v1, %v2304_v39 }
 0x470   :  { %v2310_v24 = vpop.trf.xlu0 }
 0x471   :  { %2112 = vmatmul.mubr.msk.bf16.vlgmr.msra.gmra.mrb[24].mxu1 %vm277_vm2, %v1051_v52  ;;  %2150 = vmatmul.mubr.msk.bf16.vlgmr.msra.gmra.mrb[28].mxu0 %vm277_vm2, %v1441_v48  ;;  %v2314_v26 = vunpack.i.h.bf16 %v2310_v24  ;;  %v2311_v32 = vunpack.i.l.bf16 %v2310_v24 }
 0x474   :  { %v2315_v18 = vpop.trf.xlu0 }
 0x475   :  { %v2319_v46 = vunpack.i.h.bf16 %v2315_v18  ;;  %v2316_v29 = vunpack.i.l.bf16 %v2315_v18 }
 0x477   :  { %v1052_v12 = vpack.c.bf16 %v2316_v29, %v2311_v32  ;;  %v1442_v58 = vpack.c.bf16 %v2319_v46, %v2314_v26 }
 0x478   :  { %v2320_v62 = vpop.trf.xlu0 }
 0x479   :  { %2115 = vmatprep.mubr.msk.bf16.mxu1 %vm277_vm2, %v1052_v12  ;;  %2153 = vmatprep.mubr.msk.bf16.mxu0 %vm277_vm2, %v1442_v58  ;;  %v2324_v42 = vunpack.i.h.bf16 %v2320_v62  ;;  %v2321_v23 = vunpack.i.l.bf16 %v2320_v62  ;;  %v2626_v12 = vld [vmem:[%s3557_s5] sm:$0xff] }
 0x47c   :  { %v2325_v13 = vpop.trf.xlu0 }
 0x47d   :  { %v2329_v61 = vunpack.i.h.bf16 %v2325_v13  ;;  %v2326_v50 = vunpack.i.l.bf16 %v2325_v13  ;;  %v2628_v13 = vld [vmem:[%s3557_s5 + $0x10] sm:$0xff] }
 0x47f   :  { %v1053_v28 = vpack.c.bf16 %v2326_v50, %v2321_v23  ;;  %v1443_v4 = vpack.c.bf16 %v2329_v61, %v2324_v42  ;;  %v2627_v42 = vld [vmem:[%s3557_s5 + $0x8] sm:$0xff] }
 0x480   :  { %v2330_v19 = vpop.trf.xlu0 }
 0x481   :  { %2116 = vmatmul.mubr.msk.bf16.gmra.mrb[28].mxu1 %vm277_vm2, %v1053_v28  ;;  %2154 = vmatmul.mubr.msk.bf16.gmra.mrb[32].mxu0 %vm277_vm2, %v1443_v4  ;;  %v2334_v59 = vunpack.i.h.bf16 %v2330_v19  ;;  %v2331_v10 = vunpack.i.l.bf16 %v2330_v19  ;;  %v2629_v4 = vld [vmem:[%s3557_s5 + $0x18] sm:$0xff] }
 0x484   :  { %v2335_v11 = vpop.trf.xlu0 }
 0x485   :  { %v2339_v40 = vunpack.i.h.bf16 %v2335_v11  ;;  %v2336_v3 = vunpack.i.l.bf16 %v2335_v11 }
 0x487   :  { %v1444_v2 = vpack.c.bf16 %v2339_v40, %v2334_v59  ;;  %v1054_v30 = vpack.c.bf16 %v2336_v3, %v2331_v10 }
 0x488   :  { %v2340_v25 = vpop.trf.xlu0 }
 0x489   :  { %2157 = vmatprep.mubr.msk.bf16.mxu0 %vm277_vm2, %v1444_v2  ;;  %2119 = vmatprep.mubr.msk.bf16.mxu1 %vm277_vm2, %v1054_v30  ;;  %v2344_v37 = vunpack.i.h.bf16 %v2340_v25  ;;  %v2341_v17 = vunpack.i.l.bf16 %v2340_v25 }
 0x48c   :  { %v2345_v41 = vpop.trf.xlu0 }
 0x48d   :  { %v2349_v21 = vunpack.i.h.bf16 %v2345_v41  ;;  %v2346_v34 = vunpack.i.l.bf16 %v2345_v41 }
 0x48f   :  { %v1445_v45 = vpack.c.bf16 %v2349_v21, %v2344_v37  ;;  %v1055_v60 = vpack.c.bf16 %v2346_v34, %v2341_v17 }
 0x490   :  { %v2350_v47 = vpop.trf.xlu0 }
 0x491   :  { %2158 = vmatmul.mubr.msk.bf16.gmra.mrb[36].mxu0 %vm277_vm2, %v1445_v45  ;;  %2120 = vmatmul.mubr.msk.bf16.gmra.mrb[32].mxu1 %vm277_vm2, %v1055_v60  ;;  %v2354_v20 = vunpack.i.h.bf16 %v2350_v47  ;;  %v2351_v27 = vunpack.i.l.bf16 %v2350_v47 }
 0x494   :  { %v2355_v35 = vpop.trf.xlu0 }
 0x495   :  { %v2359_v22 = vunpack.i.h.bf16 %v2355_v35  ;;  %v2356_v33 = vunpack.i.l.bf16 %v2355_v35 }
 0x497   :  { %v1446_v14 = vpack.c.bf16 %v2359_v22, %v2354_v20  ;;  %v1056_v8 = vpack.c.bf16 %v2356_v33, %v2351_v27  ;;  %v2630_v20 = vld [vmem:[%s3557_s5 + $0x30] sm:$0xff] }
 0x498   :  { %v2360_v38 = vpop.trf.xlu0 }
 0x499   :  { %2161 = vmatprep.mubr.msk.bf16.mxu0 %vm277_vm2, %v1446_v14  ;;  %2123 = vmatprep.mubr.msk.bf16.mxu1 %vm277_vm2, %v1056_v8  ;;  %v2364_v31 = vunpack.i.h.bf16 %v2360_v38  ;;  %v2361_v44 = vunpack.i.l.bf16 %v2360_v38 }
 0x49c   :  { %v2365_v36 = vpop.trf.xlu0 }
 0x49d   :  { %v2369_v55 = vunpack.i.h.bf16 %v2365_v36  ;;  %v2366_v6 = vunpack.i.l.bf16 %v2365_v36 }
 0x49f   :  { %v1447_v0 = vpack.c.bf16 %v2369_v55, %v2364_v31  ;;  %v1057_v43 = vpack.c.bf16 %v2366_v6, %v2361_v44  ;;  %v2631_v55 = vld [vmem:[%s3557_s5 + $0x20] sm:$0xff] }
 0x4a1   :  { %2162 = vmatmul.mubr.msk.bf16.gmra.mrb[40].mxu0 %vm277_vm2, %v1447_v0  ;;  %2124 = vmatmul.mubr.msk.bf16.gmra.mrb[36].mxu1 %vm277_vm2, %v1057_v43 }
 0x4a2   :  { %2143 = vmatprep.mubr.msk.bf16.mxu1 %vm2644_vm3, %v2643_v16  ;;  %2181 = vmatprep.mubr.msk.bf16.mxu0 %vm2644_vm3, %v2643_v16 }
 0x4fe   :  { %v622_v7 = vpop.f32.mrb[20].mxu1 }
 0x4ff   :  { %v2069_v57 = vpop.f32.mrb[21].mxu1 }
 0x500   :  { %v625_v15 = vpop.f32.mrb[22].mxu1 }
 0x501   :  { %v2070_v51 = vpop.f32.mrb[23].mxu1 }
 0x502   :  { %v1012_v63 = vpop.f32.mrb[24].mxu0 }
 0x503   :  { %v3171_v5 = vpack.c.bf16 %v1012_v63, %v622_v7  ;;  %v2107_v39 = vpop.f32.mrb[25].mxu0  ;;  %v2632_v7 = vld [vmem:[%s3557_s5 + $0x38] sm:$0xff] }
 0x504   :  { %v1015_v49 = vpop.f32.mrb[26].mxu0  ;;  %v2633_v39 = vld [vmem:[%s3557_s5 + $0x28] sm:$0xff] }
 0x505   :  { %v2108_v9 = vpop.f32.mrb[27].mxu0 }
 0x544   :  { %v2113_v1 = vpop.f32.mrb[24].mxu1  ;;  %v2151_v53 = vpop.f32.mrb[28].mxu0 }
 0x545   :  { %v1120_v52 = vpop.f32.mrb[25].mxu1  ;;  %v1510_v48 = vpop.f32.mrb[29].mxu0  ;;  %v1185_v29 = vmul.f32 0.35355338, %v2113_v1  ;;  %v1575_v28 = vmul.f32 0.35355338, %v2151_v53 }
 0x546   :  { %v1183_v24 = vmul.f32 0.35355338, %v1120_v52  ;;  %v2114_v26 = vpop.f32.mrb[26].mxu1  ;;  %v2152_v32 = vpop.f32.mrb[30].mxu0  ;;  %v1573_v10 = vmul.f32 0.35355338, %v1510_v48 }
 0x547   :  { %v1123_v18 = vpop.f32.mrb[27].mxu1  ;;  %v1513_v46 = vpop.f32.mrb[31].mxu0  ;;  %v3187_v61 = vadd.f32 %v2628_v13, %v1185_v29  ;;  %v1186_v50 = vmul.f32 0.35355338, %v2114_v26  ;;  %v3197_v59 = vadd.f32 %v2628_v13, %v1575_v28  ;;  %v1576_v21 = vmul.f32 0.35355338, %v2152_v32 }
 0x548   :  { %v3176_v58 = vadd.f32 %v2626_v12, %v1183_v24  ;;  %v1184_v62 = vmul.f32 0.35355338, %v1123_v18  ;;  %v3200_v41 = vadd.f32 %v2626_v12, %v1573_v10  ;;  %v1574_v45 = vmul.f32 0.35355338, %v1513_v46 }
 0x549   :  { %v3194_v19 = vadd.f32 %v2629_v4, %v1186_v50  ;;  %v3203_v34 = vadd.f32 %v2629_v4, %v1576_v21  ;;  %v2635_v4 = vld [vmem:[%s3557_s5 + $0x78] sm:$0xff] }
 0x54a   :  { %v3181_v23 = vadd.f32 %v2627_v42, %v1184_v62  ;;  %1215 = vmax.xlane.f32.xlu1 %v3176_v58  ;;  %v3206_v60 = vadd.f32 %v2627_v42, %v1574_v45  ;;  %v2634_v62 = vld [vmem:[%s3557_s5 + $0x68] sm:$0xff] }
 0x54c   :  { %1217 = vmax.xlane.f32.xlu0 %v3181_v23 }
 0x54e   :  { %1219 = vmax.xlane.f32.xlu1 %v3187_v61 }
 0x552   :  { %1221 = vmax.xlane.f32.xlu1 %v3194_v19 }
 0x554   :  { %v2117_v11 = vpop.f32.mrb[28].mxu1  ;;  %v2155_v40 = vpop.f32.mrb[32].mxu0 }
 0x555   :  { %v1136_v3 = vpop.f32.mrb[29].mxu1  ;;  %v1526_v2 = vpop.f32.mrb[33].mxu0  ;;  %v1189_v47 = vmul.f32 0.35355338, %v2117_v11  ;;  %v1579_v43 = vmul.f32 0.35355338, %v2155_v40 }
 0x556   :  { %1609 = vmax.xlane.f32.xlu1 %v3197_v59  ;;  %v2118_v30 = vpop.f32.mrb[30].mxu1  ;;  %v2156_v25 = vpop.f32.mrb[34].mxu0  ;;  %v1187_v35 = vmul.f32 0.35355338, %v1136_v3  ;;  %v1577_v63 = vmul.f32 0.35355338, %v1526_v2 }
 0x557   :  { %v1139_v37 = vpop.f32.mrb[31].mxu1  ;;  %v1529_v17 = vpop.f32.mrb[35].mxu0  ;;  %v3212_v27 = vadd.f32 %v2630_v20, %v1189_v47  ;;  %v1190_v0 = vmul.f32 0.35355338, %v2118_v30  ;;  %v3233_v15 = vadd.f32 %v2630_v20, %v1579_v43  ;;  %v1580_v46 = vmul.f32 0.35355338, %v2156_v25 }
 0x558   :  { %v3224_v6 = vadd.f32 %v2631_v55, %v1187_v35  ;;  %v1188_v51 = vmul.f32 0.35355338, %v1139_v37  ;;  %v3246_v18 = vadd.f32 %v2631_v55, %v1577_v63  ;;  %v1578_v50 = vmul.f32 0.35355338, %v1529_v17  ;;  %v2636_v2 = vld [vmem:[%s3557_s5 + $0x50] sm:$0xff]  ;;  %v2637_v37 = vld [vmem:[%s3557_s5 + $0x40] sm:$0xff] }
 0x559   :  { %v3230_v57 = vadd.f32 %v2632_v7, %v1190_v0  ;;  %v3254_v13 = vadd.f32 %v2632_v7, %v1580_v46  ;;  %v2638_v47 = vld [vmem:[%s3557_s5 + $0x58] sm:$0xff] }
 0x55a   :  { %1605 = vmax.xlane.f32.xlu1 %v3200_v41  ;;  %v3239_v49 = vadd.f32 %v2633_v39, %v1188_v51  ;;  %v3263_v11 = vadd.f32 %v2633_v39, %v1578_v50  ;;  %v2640_v51 = vld [vmem:[%s3557_s5 + $0x60] sm:$0xff] }
 0x55e   :  { %1611 = vmax.xlane.f32.xlu1 %v3203_v34 }
 0x562   :  { %1607 = vmax.xlane.f32.xlu1 %v3206_v60 }
 0x564   :  { %v2159_v22 = vpop.f32.mrb[36].mxu0  ;;  %v2121_v33 = vpop.f32.mrb[32].mxu1 }
 0x565   :  { %v3214_v14 = vpop.f32.mrb[37].mxu0  ;;  %v1152_v8 = vpop.f32.mrb[33].mxu1  ;;  %v1193_v40 = vmul.f32 0.35355338, %v2121_v33  ;;  %v1583_v45 = vmul.f32 0.35355338, %v2159_v22 }
 0x566   :  { %1227 = vmax.xlane.f32.xlu1 %v3212_v27  ;;  %v3217_v38 = vpop.f32.mrb[38].mxu0  ;;  %v2122_v31 = vpop.f32.mrb[34].mxu1  ;;  %v1191_v25 = vmul.f32 0.35355338, %v1152_v8  ;;  %v1581_v8 = vmul.f32 0.35355338, %v3214_v14 }
 0x567   :  { %v3219_v44 = vpop.f32.mrb[39].mxu0  ;;  %v1155_v36 = vpop.f32.mrb[35].mxu1  ;;  %v3272_v30 = vadd.f32 %v2636_v2, %v1193_v40  ;;  %v1194_v21 = vmul.f32 0.35355338, %v2122_v31  ;;  %v3288_v35 = vadd.f32 %v2636_v2, %v1583_v45  ;;  %v2639_v31 = vld [vmem:[%s3557_s5 + $0x48] sm:$0xff] }
 0x568   :  { %v3279_v17 = vadd.f32 %v2637_v37, %v1191_v25  ;;  %v1192_v33 = vmul.f32 0.35355338, %v1155_v36  ;;  %v3298_v55 = vadd.f32 %v2637_v37, %v1581_v8  ;;  %v1582_v0 = vmul.f32 0.35355338, %v3219_v44 }
 0x569   :  { %v3285_v20 = vadd.f32 %v2638_v47, %v1194_v21  ;;  %v1584_v36 = vmul.f32 0.35355338, %v3217_v38 }
 0x56a   :  { %1223 = vmax.xlane.f32.xlu1 %v3224_v6  ;;  %v3295_v22 = vadd.f32 %v2639_v31, %v1192_v33  ;;  %v3303_v43 = vadd.f32 %v2639_v31, %v1582_v0 }
 0x56b   :  { %v3306_v14 = vadd.f32 %v2638_v47, %v1584_v36 }
 0x56e   :  { %1229 = vmax.xlane.f32.xlu1 %v3230_v57 }
 0x572   :  { %1617 = vmax.xlane.f32.xlu1 %v3233_v15 }
 0x574   :  { %v3241_v9 = vpop.f32.mrb[40].mxu0  ;;  %v3243_v1 = vpop.f32.mrb[36].mxu1 }
 0x575   :  { %v1558_v53 = vpop.f32.mrb[41].mxu0  ;;  %v1168_v52 = vpop.f32.mrb[37].mxu1 }
 0x576   :  { %1225 = vmax.xlane.f32.xlu1 %v3239_v49  ;;  %v2164_v48 = vpop.f32.mrb[42].mxu0  ;;  %v2126_v24 = vpop.f32.mrb[38].mxu1  ;;  %v1195_v7 = vmul.f32 0.35355338, %v1168_v52  ;;  %v1585_v39 = vmul.f32 0.35355338, %v1558_v53 }
 0x577   :  { %v1561_v26 = vpop.f32.mrb[43].mxu0  ;;  %v1171_v32 = vpop.f32.mrb[39].mxu1  ;;  %v1198_v12 = vmul.f32 0.35355338, %v2126_v24  ;;  %v1588_v28 = vmul.f32 0.35355338, %v2164_v48 }
 0x578   :  { %v1586_v29 = vmul.f32 0.35355338, %v1561_v26  ;;  %v3312_v63 = vadd.f32 %v2640_v51, %v1195_v7  ;;  %v1196_v44 = vmul.f32 0.35355338, %v1171_v32  ;;  %v3318_v48 = vadd.f32 %v2640_v51, %v1585_v39  ;;  %v2641_v26 = vld [vmem:[%s3557_s5 + $0x70] sm:$0xff] }
 0x579   :  { %v3259_v10 = vadd.f32 %v2635_v4, %v1198_v12  ;;  %v3265_v3 = vadd.f32 %v2635_v4, %v1588_v28  ;;  %v1197_v52 = vmul.f32 0.35355338, %v3243_v1  ;;  %v1587_v24 = vmul.f32 0.35355338, %v3241_v9 }
 0x57a   :  { %v3251_v42 = vadd.f32 %v2634_v62, %v1586_v29  ;;  %1613 = vmax.xlane.f32.xlu1 %v3246_v18  ;;  %v3315_v38 = vadd.f32 %v2634_v62, %v1196_v44 }
 0x57b   :  { %v3326_v32 = vadd.f32 %v2641_v26, %v1197_v52  ;;  %v3329_v53 = vadd.f32 %v2641_v26, %v1587_v24 }
 0x57c   :  { %1631 = vmax.xlane.f32.xlu0 %v3251_v42 }
 0x57e   :  { %1619 = vmax.xlane.f32.xlu1 %v3254_v13 }
 0x580   :  { %1245 = vmax.xlane.f32.xlu0 %v3259_v10 }
 0x582   :  { %1615 = vmax.xlane.f32.xlu1 %v3263_v11 }
 0x584   :  { %1635 = vmax.xlane.f32.xlu0 %v3265_v3 }
 0x586   :  { %1235 = vmax.xlane.f32.xlu1 %v3272_v30 }
 0x58a   :  { %1231 = vmax.xlane.f32.xlu1 %v3279_v17 }
 0x58e   :  { %1237 = vmax.xlane.f32.xlu1 %v3285_v20 }
 0x592   :  { %1625 = vmax.xlane.f32.xlu1 %v3288_v35 }
 0x596   :  { %1233 = vmax.xlane.f32.xlu1 %v3295_v22 }
 0x59a   :  { %1621 = vmax.xlane.f32.xlu1 %v3298_v55 }
 0x59e   :  { %1623 = vmax.xlane.f32.xlu1 %v3303_v43 }
 0x5a2   :  { %1627 = vmax.xlane.f32.xlu1 %v3306_v14 }
 0x5a6   :  { %1239 = vmax.xlane.f32.xlu1 %v3312_v63 }
 0x5aa   :  { %1241 = vmax.xlane.f32.xlu1 %v3315_v38 }
 0x5ae   :  { %1629 = vmax.xlane.f32.xlu1 %v3318_v48 }
 0x5b2   :  { %1243 = vmax.xlane.f32.xlu1 %v3326_v32 }
 0x5b6   :  { %1633 = vmax.xlane.f32.xlu1 %v3329_v53 }
 0x5d7   :  { %v1216_v46 = vpop.xlane.xlu1 %1215 }
 0x5d8   :  { %v1247_v29 = vsub.f32 %v3176_v58, %v1216_v46 }
 0x5d9   :  { %v1218_v12 = vpop.xlane.xlu0 %1217 }
 0x5da   :  { %v1263_v50 = vmul.f32 1.442695, %v1247_v29  ;;  %v1248_v28 = vsub.f32 %v3181_v23, %v1218_v12 }
 0x5db   :  { %v1220_v1 = vpop.xlane.xlu1 %1219 }
 0x5dc   :  { %v1249_v62 = vsub.f32 %v3187_v61, %v1220_v1  ;;  %v1265_v25 = vmul.f32 1.442695, %v1248_v28 }
 0x5de   :  { %v1267_v9 = vmul.f32 1.442695, %v1249_v62 }
 0x5df   :  { %v1222_v4 = vpop.xlane.xlu1 %1221 }
 0x5e0   :  { %2498 = vpow2.f32 %v1267_v9  ;;  %v1250_v40 = vsub.f32 %v3194_v19, %v1222_v4 }
 0x5e1   :  { %2500 = vpow2.f32 %v1263_v50 }
 0x5e2   :  { %v1269_v2 = vmul.f32 1.442695, %v1250_v40 }
 0x5e3   :  { %v1610_v37 = vpop.xlane.xlu1 %1609 }
 0x5e4   :  { %2502 = vpow2.f32 %v1269_v2  ;;  %v1639_v21 = vsub.f32 %v3197_v59, %v1610_v37 }
 0x5e5   :  { %2504 = vpow2.f32 %v1265_v25 }
 0x5e6   :  { %v1657_v58 = vmul.f32 1.442695, %v1639_v21 }
 0x5e7   :  { %v1606_v45 = vpop.xlane.xlu1 %1605 }
 0x5e8   :  { %2506 = vpow2.f32 %v1657_v58  ;;  %v1637_v61 = vsub.f32 %v3200_v41, %v1606_v45 }
 0x5ea   :  { %v3338_v47 = vpop.eup %2498  ;;  %v1653_v23 = vmul.f32 1.442695, %v1637_v61 }
 0x5eb   :  { %1299 = vadd.xlane.f32.xlu1 %v3338_v47  ;;  %v1612_v33 = vpop.xlane.xlu1 %1611  ;;  %v3341_v19 = vpop.eup %2500 }
 0x5ec   :  { %2508 = vpow2.f32 %v1653_v23  ;;  %v1640_v31 = vsub.f32 %v3203_v34, %v1612_v33 }
 0x5ee   :  { %v3343_v8 = vpop.eup %2502  ;;  %v1659_v51 = vmul.f32 1.442695, %v1640_v31 }
 0x5ef   :  { %1295 = vadd.xlane.f32.xlu1 %v3341_v19  ;;  %1301 = vadd.xlane.f32.xlu0 %v3343_v8  ;;  %v1608_v59 = vpop.xlane.xlu1 %1607  ;;  %v3349_v0 = vpop.eup %2504 }
 0x5f0   :  { %v1638_v41 = vsub.f32 %v3206_v60, %v1608_v59 }
 0x5f2   :  { %v3351_v36 = vpop.eup %2506  ;;  %v1655_v7 = vmul.f32 1.442695, %v1638_v41 }
 0x5f3   :  { %1297 = vadd.xlane.f32.xlu0 %v3349_v0  ;;  %1689 = vadd.xlane.f32.xlu1 %v3351_v36  ;;  %v1228_v44 = vpop.xlane.xlu1 %1227 }
 0x5f4   :  { %2510 = vpow2.f32 %v1655_v7  ;;  %v1253_v34 = vsub.f32 %v3212_v27, %v1228_v44 }
 0x5f5   :  { %2512 = vpow2.f32 %v1659_v51 }
 0x5f6   :  { %v3356_v39 = vpop.eup %2508  ;;  %v1275_v52 = vmul.f32 1.442695, %v1253_v34 }
 0x5f7   :  { %1685 = vadd.xlane.f32.xlu1 %v3356_v39  ;;  %v1224_v60 = vpop.xlane.xlu1 %1223 }
 0x5f8   :  { %2514 = vpow2.f32 %v1275_v52  ;;  %v1251_v24 = vsub.f32 %v3224_v6, %v1224_v60 }
 0x5fa   :  { %v1271_v26 = vmul.f32 1.442695, %v1251_v24 }
 0x5fb   :  { %v1230_v46 = vpop.xlane.xlu1 %1229 }
 0x5fc   :  { %2516 = vpow2.f32 %v1271_v26  ;;  %v1254_v29 = vsub.f32 %v3230_v57, %v1230_v46 }
 0x5fe   :  { %v3361_v1 = vpop.eup %2510  ;;  %v1277_v12 = vmul.f32 1.442695, %v1254_v29 }
 0x5ff   :  { %1687 = vadd.xlane.f32.xlu0 %v3361_v1  ;;  %v1618_v27 = vpop.xlane.xlu1 %1617  ;;  %v3365_v9 = vpop.eup %2512 }
 0x600   :  { %2518 = vpow2.f32 %v1277_v12  ;;  %v1643_v62 = vsub.f32 %v3233_v15, %v1618_v27 }
 0x602   :  { %v3367_v50 = vpop.eup %2514  ;;  %v1665_v28 = vmul.f32 1.442695, %v1643_v62 }
 0x603   :  { %1691 = vadd.xlane.f32.xlu0 %v3365_v9  ;;  %1307 = vadd.xlane.f32.xlu1 %v3367_v50  ;;  %v1226_v6 = vpop.xlane.xlu1 %1225 }
 0x604   :  { %2520 = vpow2.f32 %v1665_v28  ;;  %v1252_v57 = vsub.f32 %v3239_v49, %v1226_v6 }
 0x606   :  { %v3372_v4 = vpop.eup %2516  ;;  %v1273_v40 = vmul.f32 1.442695, %v1252_v57 }
 0x607   :  { %1303 = vadd.xlane.f32.xlu1 %v3372_v4  ;;  %v1614_v2 = vpop.xlane.xlu1 %1613 }
 0x608   :  { %2522 = vpow2.f32 %v1273_v40  ;;  %v1641_v15 = vsub.f32 %v3246_v18, %v1614_v2 }
 0x609   :  { %v1632_v62 = vpop.xlane.xlu0 %1631 }
 0x60a   :  { %v3376_v25 = vpop.eup %2518  ;;  %v1661_v37 = vmul.f32 1.442695, %v1641_v15 }
 0x60b   :  { %1309 = vadd.xlane.f32.xlu0 %v3376_v25  ;;  %v1620_v21 = vpop.xlane.xlu1 %1619 }
 0x60c   :  { %2524 = vpow2.f32 %v1661_v37  ;;  %v1644_v49 = vsub.f32 %v3254_v13, %v1620_v21 }
 0x60e   :  { %v3379_v58 = vpop.eup %2520  ;;  %v1667_v18 = vmul.f32 1.442695, %v1644_v49 }
 0x60f   :  { %1697 = vadd.xlane.f32.xlu1 %v3379_v58  ;;  %v1616_v45 = vpop.xlane.xlu1 %1615 }
 0x610   :  { %v1642_v61 = vsub.f32 %v3263_v11, %v1616_v45 }
 0x612   :  { %v3384_v23 = vpop.eup %2522  ;;  %v1663_v33 = vmul.f32 1.442695, %v1642_v61 }
 0x613   :  { %1305 = vadd.xlane.f32.xlu0 %v3384_v23  ;;  %v1236_v31 = vpop.xlane.xlu1 %1235 }
 0x614   :  { %2526 = vpow2.f32 %v1663_v33  ;;  %v1257_v59 = vsub.f32 %v3272_v30, %v1236_v31 }
 0x615   :  { %2528 = vpow2.f32 %v1667_v18 }
 0x616   :  { %v3388_v41 = vpop.eup %2524  ;;  %v1283_v7 = vmul.f32 1.442695, %v1257_v59  ;;  %v1650_v59 = vsub.f32 %v3251_v42, %v1632_v62 }
 0x617   :  { %1693 = vadd.xlane.f32.xlu1 %v3388_v41  ;;  %v1232_v13 = vpop.xlane.xlu1 %1231 }
 0x618   :  { %2530 = vpow2.f32 %v1283_v7  ;;  %v1255_v11 = vsub.f32 %v3279_v17, %v1232_v13 }
 0x61a   :  { %v1279_v51 = vmul.f32 1.442695, %v1255_v11 }
 0x61b   :  { %v1238_v44 = vpop.xlane.xlu1 %1237 }
 0x61c   :  { %2532 = vpow2.f32 %v1279_v51  ;;  %v1258_v34 = vsub.f32 %v3285_v20, %v1238_v44  ;;  %v1679_v44 = vmul.f32 1.442695, %v1650_v59 }
 0x61e   :  { %v3393_v52 = vpop.eup %2526  ;;  %v1285_v60 = vmul.f32 1.442695, %v1258_v34 }
 0x61f   :  { %1695 = vadd.xlane.f32.xlu0 %v3393_v52  ;;  %v1626_v30 = vpop.xlane.xlu1 %1625  ;;  %v3397_v26 = vpop.eup %2528 }
 0x620   :  { %2534 = vpow2.f32 %v1285_v60  ;;  %v1647_v24 = vsub.f32 %v3288_v35, %v1626_v30 }
 0x622   :  { %v3399_v46 = vpop.eup %2530  ;;  %v1673_v29 = vmul.f32 1.442695, %v1647_v24 }
 0x623   :  { %1699 = vadd.xlane.f32.xlu0 %v3397_v26  ;;  %1315 = vadd.xlane.f32.xlu1 %v3399_v46  ;;  %v1234_v17 = vpop.xlane.xlu1 %1233 }
 0x624   :  { %2536 = vpow2.f32 %v1673_v29  ;;  %v1256_v20 = vsub.f32 %v3295_v22, %v1234_v17  ;;  %v1246_v22 = vpop.xlane.xlu0 %1245 }
 0x625   :  { %v1262_v49 = vsub.f32 %v3259_v10, %v1246_v22  ;;  %v1808_v22 = vld [vmem:[%s3558_s4 + $0x10] sm:$0xff] }
 0x626   :  { %v3404_v12 = vpop.eup %2532  ;;  %v1281_v27 = vmul.f32 1.442695, %v1256_v20 }
 0x627   :  { %1311 = vadd.xlane.f32.xlu1 %v3404_v12  ;;  %v1622_v35 = vpop.xlane.xlu1 %1621  ;;  %v1293_v18 = vmul.f32 1.442695, %v1262_v49  ;;  %v1807_v49 = vld [vmem:[%s3558_s4 + $0x8] sm:$0xff] }
 0x628   :  { %2538 = vpow2.f32 %v1281_v27  ;;  %v1645_v28 = vsub.f32 %v3298_v55, %v1622_v35  ;;  %v1636_v10 = vpop.xlane.xlu0 %1635 }
 0x629   :  { %v1652_v11 = vsub.f32 %v3265_v3, %v1636_v10 }
 0x62a   :  { %v3408_v6 = vpop.eup %2534  ;;  %v1669_v57 = vmul.f32 1.442695, %v1645_v28 }
 0x62b   :  { %1317 = vadd.xlane.f32.xlu0 %v3408_v6  ;;  %v1624_v40 = vpop.xlane.xlu1 %1623  ;;  %v1683_v60 = vmul.f32 1.442695, %v1652_v11 }
 0x62c   :  { %2540 = vpow2.f32 %v1669_v57  ;;  %v1646_v2 = vsub.f32 %v3303_v43, %v1624_v40 }
 0x62e   :  { %v3412_v15 = vpop.eup %2536  ;;  %v1671_v37 = vmul.f32 1.442695, %v1646_v2  ;;  %v59_v2 = vld [vmem:[%s3556_s2 + $0x58] sm:$0xff] }
 0x62f   :  { %1705 = vadd.xlane.f32.xlu1 %v3412_v15  ;;  %v1628_v21 = vpop.xlane.xlu1 %1627 }
 0x630   :  { %2542 = vpow2.f32 %v1671_v37  ;;  %v1648_v55 = vsub.f32 %v3306_v14, %v1628_v21  ;;  %v58_v37 = vld [vmem:[%s3556_s2 + $0x50] sm:$0xff]  ;;  %v1806_v21 = vld [vmem:[%s3558_s4] sm:$0xff] }
 0x632   :  { %v3417_v45 = vpop.eup %2538  ;;  %v1675_v61 = vmul.f32 1.442695, %v1648_v55  ;;  %v1809_v55 = vld [vmem:[%s3558_s4 + $0x18] sm:$0xff] }
 0x633   :  { %1313 = vadd.xlane.f32.xlu0 %v3417_v45  ;;  %v1240_v33 = vpop.xlane.xlu1 %1239 }
 0x634   :  { %2544 = vpow2.f32 %v1675_v61  ;;  %v1259_v30 = vsub.f32 %v3312_v63, %v1240_v33 }
 0x635   :  { %2546 = vpow2.f32 %v1293_v18 }
 0x636   :  { %v3420_v43 = vpop.eup %2540  ;;  %v1287_v17 = vmul.f32 1.442695, %v1259_v30 }
 0x637   :  { %1701 = vadd.xlane.f32.xlu1 %v3420_v43  ;;  %v1242_v31 = vpop.xlane.xlu1 %1241 }
 0x638   :  { %v1260_v7 = vsub.f32 %v3315_v38, %v1242_v31 }
 0x63a   :  { %v3425_v14 = vpop.eup %2542  ;;  %v1289_v13 = vmul.f32 1.442695, %v1260_v7 }
 0x63b   :  { %1703 = vadd.xlane.f32.xlu0 %v3425_v14  ;;  %v1630_v51 = vpop.xlane.xlu1 %1629 }
 0x63c   :  { %2548 = vpow2.f32 %v1289_v13  ;;  %v1649_v63 = vsub.f32 %v3318_v48, %v1630_v51 }
 0x63d   :  { %2550 = vpow2.f32 %v1679_v44 }
 0x63e   :  { %v3429_v34 = vpop.eup %2544  ;;  %2552 = vpow2.f32 %v1683_v60  ;;  %v1677_v35 = vmul.f32 1.442695, %v1649_v63 }
 0x63f   :  { %1707 = vadd.xlane.f32.xlu0 %v3429_v34  ;;  %v1244_v42 = vpop.xlane.xlu1 %1243  ;;  %v3434_v24 = vpop.eup %2546 }
 0x640   :  { %v1261_v38 = vsub.f32 %v3326_v32, %v1244_v42 }
 0x642   :  { %v1291_v29 = vmul.f32 1.442695, %v1261_v38 }
 0x643   :  { %1325 = vadd.xlane.f32.xlu0 %v3434_v24  ;;  %v1634_v3 = vpop.xlane.xlu1 %1633 }
 0x644   :  { %2554 = vpow2.f32 %v1291_v29  ;;  %v1651_v20 = vsub.f32 %v3329_v53, %v1634_v3 }
 0x645   :  { %2556 = vpow2.f32 %v1287_v17 }
 0x646   :  { %v3438_v27 = vpop.eup %2548  ;;  %v1681_v62 = vmul.f32 1.442695, %v1651_v20 }
 0x647   :  { %1321 = vadd.xlane.f32.xlu0 %v3438_v27  ;;  %v3442_v32 = vpop.eup %2550 }
 0x648   :  { %2558 = vpow2.f32 %v1681_v62  ;;  %v3445_v28 = vpop.eup %2552 }
 0x649   :  { %2560 = vpow2.f32 %v1677_v35 }
 0x64b   :  { %1711 = vadd.xlane.f32.xlu0 %v3442_v32 }
 0x64e   :  { %v3447_v57 = vpop.eup %2554 }
 0x64f   :  { %1715 = vadd.xlane.f32.xlu0 %v3445_v28  ;;  %1323 = vadd.xlane.f32.xlu1 %v3447_v57  ;;  %v3451_v53 = vpop.eup %2556 }
 0x652   :  { %v3454_v48 = vpop.eup %2558 }
 0x653   :  { %1319 = vadd.xlane.f32.xlu1 %v3451_v53  ;;  %v3457_v40 = vpop.eup %2560 }
 0x657   :  { %1713 = vadd.xlane.f32.xlu1 %v3454_v48 }
 0x65b   :  { %1709 = vadd.xlane.f32.xlu1 %v3457_v40 }
 0x665   :  { %117 = vperm.xlu0 %2204, %v59_v2  }
 0x669   :  { %1822 = vperm.xlu0 %2204, %v1808_v22  }
 0x66c   :  { %112 = vperm.xlu1 %2205, %v58_v37  }
 0x670   :  { %1812 = vperm.xlu1 %2205, %v1806_v21  }
 0x674   :  { %1817 = vperm.xlu1 %2205, %v1807_v49  }
 0x678   :  { %1827 = vperm.xlu1 %2205, %v1809_v55   ;;  %v1300_v61 = vpop.xlane.xlu1 %1299 }
 0x67c   :  { %v1302_v33 = vpop.xlane.xlu0 %1301  ;;  %v1296_v18 = vpop.xlane.xlu1 %1295 }
 0x67d   :  { %2562 = vrcp.f32 %v1296_v18 }
 0x680   :  { %v1298_v31 = vpop.xlane.xlu0 %1297  ;;  %v1690_v59 = vpop.xlane.xlu1 %1689 }
 0x681   :  { %2564 = vrcp.f32 %v1298_v31 }
 0x682   :  { %2566 = vrcp.f32 %v1302_v33 }
 0x683   :  { %2568 = vrcp.f32 %v1300_v61 }
 0x684   :  { %v1686_v10 = vpop.xlane.xlu1 %1685 }
 0x685   :  { %2570 = vrcp.f32 %v1686_v10 }
 0x687   :  { %v2563_v7 = vpop.eup %2562 }
 0x688   :  { %v1328_v51 = vmul.f32 %v2563_v7, %v3341_v19 }
 0x68b   :  { %v2565_v13 = vpop.eup %2564 }
 0x68c   :  { %v1688_v11 = vpop.xlane.xlu0 %1687  ;;  %v1330_v44 = vmul.f32 %v2565_v13, %v3349_v0  ;;  %v2567_v42 = vpop.eup %2566 }
 0x68d   :  { %2572 = vrcp.f32 %v1688_v11  ;;  %v2569_v38 = vpop.eup %2568  ;;  %v1334_v29 = vmul.f32 %v2567_v42, %v3343_v8 }
 0x68e   :  { %v1360_v60 = vpack.c.bf16 %v1330_v44, %v1328_v51  ;;  %v1332_v3 = vmul.f32 %v2569_v38, %v3338_v47 }
 0x68f   :  { %v2571_v17 = vpop.eup %2570 }
 0x690   :  { %v1692_v30 = vpop.xlane.xlu0 %1691  ;;  %2128 = vmatpush3.bf16.xpose.msra.mxu1 %v1360_v60  ;;  %v1308_v20 = vpop.xlane.xlu1 %1307  ;;  %v1361_v63 = vpack.c.bf16 %v1334_v29, %v1332_v3  ;;  %v1718_v0 = vmul.f32 %v2571_v17, %v3356_v39 }
 0x691   :  { %2574 = vrcp.f32 %v1692_v30  ;;  %2129 = vmatprep.subr.bf16.mxu1 %v2643_v16 }
 0x692   :  { %2576 = vrcp.f32 %v1690_v59 }
 0x694   :  { %v1304_v22 = vpop.xlane.xlu1 %1303 }
 0x695   :  { %2578 = vrcp.f32 %v1304_v22 }
 0x697   :  { %v2573_v19 = vpop.eup %2572 }
 0x698   :  { %2130 = vmatpush3.bf16.xpose.msra.mxu1 %v1361_v63  ;;  %v1720_v62 = vmul.f32 %v2573_v19, %v3361_v1  ;;  %v1310_v37 = vpop.xlane.xlu0 %1309 }
 0x699   :  { %2131 = vmatprep.subr.bf16.mxu1 %v2643_v16 }
 0x69a   :  { %v1750_v35 = vpack.c.bf16 %v1720_v62, %v1718_v0 }
 0x69b   :  { %v2575_v2 = vpop.eup %2574 }
 0x69c   :  { %2166 = vmatpush3.bf16.xpose.msra.mxu0 %v1750_v35  ;;  %v2577_v8 = vpop.eup %2576  ;;  %v1724_v47 = vmul.f32 %v2575_v2, %v3365_v9  ;;  %v1698_v55 = vpop.xlane.xlu1 %1697 }
 0x69d   :  { %2167 = vmatprep.subr.bf16.mxu0 %v2643_v16  ;;  %v1722_v49 = vmul.f32 %v2577_v8, %v3351_v36 }
 0x69f   :  { %v1751_v39 = vpack.c.bf16 %v1724_v47, %v1722_v49  ;;  %v2579_v61 = vpop.eup %2578 }
 0x6a0   :  { %v1306_v21 = vpop.xlane.xlu0 %1305  ;;  %v1336_v31 = vmul.f32 %v2579_v61, %v3372_v4 }
 0x6a1   :  { %2580 = vrcp.f32 %v1306_v21 }
 0x6a2   :  { %2582 = vrcp.f32 %v1310_v37 }
 0x6a3   :  { %2584 = vrcp.f32 %v1308_v20 }
 0x6a4   :  { %2168 = vmatpush3.bf16.xpose.msra.mxu0 %v1751_v39  ;;  %v1694_v1 = vpop.xlane.xlu1 %1693 }
 0x6a5   :  { %2169 = vmatprep.subr.bf16.mxu0 %v2643_v16  ;;  %2586 = vrcp.f32 %v1694_v1 }
 0x6ab   :  { %v2581_v33 = vpop.eup %2580 }
 0x6ac   :  { %v1696_v18 = vpop.xlane.xlu0 %1695  ;;  %v1338_v9 = vmul.f32 %v2581_v33, %v3384_v23  ;;  %v2583_v36 = vpop.eup %2582 }
 0x6ad   :  { %2588 = vrcp.f32 %v1696_v18  ;;  %v2585_v7 = vpop.eup %2584  ;;  %v1342_v13 = vmul.f32 %v2583_v36, %v3376_v25 }
 0x6ae   :  { %v1362_v59 = vpack.c.bf16 %v1338_v9, %v1336_v31  ;;  %v1340_v11 = vmul.f32 %v2585_v7, %v3367_v50 }
 0x6af   :  { %v2587_v51 = vpop.eup %2586 }
 0x6b0   :  { %v1700_v10 = vpop.xlane.xlu0 %1699  ;;  %2132 = vmatpush3.bf16.xpose.msra.mxu1 %v1362_v59  ;;  %v1316_v44 = vpop.xlane.xlu1 %1315  ;;  %v1363_v60 = vpack.c.bf16 %v1342_v13, %v1340_v11  ;;  %v1726_v23 = vmul.f32 %v2587_v51, %v3388_v41 }
 0x6b1   :  { %2590 = vrcp.f32 %v1700_v10  ;;  %2133 = vmatprep.subr.bf16.mxu1 %v2643_v16 }
 0x6b2   :  { %2592 = vrcp.f32 %v1698_v55 }
 0x6b4   :  { %v1312_v29 = vpop.xlane.xlu1 %1311 }
 0x6b5   :  { %2594 = vrcp.f32 %v1312_v29 }
 0x6b7   :  { %v2589_v4 = vpop.eup %2588 }
 0x6b8   :  { %2134 = vmatpush3.bf16.xpose.msra.mxu1 %v1363_v60  ;;  %v1728_v42 = vmul.f32 %v2589_v4, %v3393_v52  ;;  %v1318_v3 = vpop.xlane.xlu0 %1317 }
 0x6b9   :  { %2135 = vmatprep.subr.bf16.mxu1 %v2643_v16 }
 0x6ba   :  { %v1752_v30 = vpack.c.bf16 %v1728_v42, %v1726_v23 }
 0x6bb   :  { %v2591_v38 = vpop.eup %2590 }
 0x6bc   :  { %2170 = vmatpush3.bf16.xpose.msra.mxu0 %v1752_v30  ;;  %v2593_v25 = vpop.eup %2592  ;;  %v1732_v50 = vmul.f32 %v2591_v38, %v3397_v26  ;;  %v1706_v17 = vpop.xlane.xlu1 %1705 }
 0x6bd   :  { %2171 = vmatprep.subr.bf16.mxu0 %v2643_v16  ;;  %v1730_v63 = vmul.f32 %v2593_v25, %v3379_v58 }
 0x6bf   :  { %v1753_v41 = vpack.c.bf16 %v1732_v50, %v1730_v63  ;;  %v2595_v0 = vpop.eup %2594 }
 0x6c0   :  { %v1314_v20 = vpop.xlane.xlu0 %1313  ;;  %v1344_v26 = vmul.f32 %v2595_v0, %v3404_v12  ;;  %v1801_v0 = vld [vmem:[%s3559_s3 + $0x18] sm:$0xff] }
 0x6c1   :  { %2596 = vrcp.f32 %v1314_v20 }
 0x6c2   :  { %2598 = vrcp.f32 %v1318_v3 }
 0x6c3   :  { %2600 = vrcp.f32 %v1316_v44 }
 0x6c4   :  { %2172 = vmatpush3.bf16.xpose.msra.mxu0 %v1753_v41  ;;  %v1702_v52 = vpop.xlane.xlu1 %1701 }
 0x6c5   :  { %2173 = vmatprep.subr.bf16.mxu0 %v2643_v16  ;;  %2602 = vrcp.f32 %v1702_v52 }
 0x6c8   :  { %v1704_v19 = vpop.xlane.xlu0 %1703 }
 0x6c9   :  { %2604 = vrcp.f32 %v1704_v19 }
 0x6cb   :  { %v2597_v62 = vpop.eup %2596 }
 0x6cc   :  { %v1708_v35 = vpop.xlane.xlu0 %1707  ;;  %v1346_v2 = vmul.f32 %v2597_v62, %v3417_v45  ;;  %v2599_v22 = vpop.eup %2598 }
 0x6cd   :  { %2606 = vrcp.f32 %v1708_v35  ;;  %v2601_v37 = vpop.eup %2600  ;;  %v1350_v47 = vmul.f32 %v2599_v22, %v3408_v6 }
 0x6ce   :  { %v1364_v58 = vpack.c.bf16 %v1346_v2, %v1344_v26  ;;  %2608 = vrcp.f32 %v1706_v17  ;;  %v1348_v49 = vmul.f32 %v2601_v37, %v3399_v46 }
 0x6cf   :  { %v2603_v8 = vpop.eup %2602 }
 0x6d0   :  { %2136 = vmatpush3.bf16.xpose.msra.mxu1 %v1364_v58  ;;  %v1734_v39 = vmul.f32 %v2603_v8, %v3420_v43  ;;  %v1326_v55 = vpop.xlane.xlu0 %1325  ;;  %v1365_v45 = vpack.c.bf16 %v1350_v47, %v1348_v49 }
 0x6d1   :  { %2137 = vmatprep.subr.bf16.mxu1 %v2643_v16 }
 0x6d3   :  { %v2605_v21 = vpop.eup %2604 }
 0x6d4   :  { %v1736_v12 = vmul.f32 %v2605_v21, %v3425_v14  ;;  %v1322_v18 = vpop.xlane.xlu0 %1321 }
 0x6d5   :  { %2610 = vrcp.f32 %v1322_v18 }
 0x6d6   :  { %v1754_v1 = vpack.c.bf16 %v1736_v12, %v1734_v39 }
 0x6d7   :  { %v2607_v61 = vpop.eup %2606 }
 0x6d8   :  { %2138 = vmatpush3.bf16.xpose.msra.mxu1 %v1365_v45  ;;  %2174 = vmatpush3.bf16.xpose.msra.mxu0 %v1754_v1  ;;  %v2609_v33 = vpop.eup %2608  ;;  %v1740_v6 = vmul.f32 %v2607_v61, %v3429_v34  ;;  %v1712_v9 = vpop.xlane.xlu0 %1711 }
 0x6d9   :  { %2175 = vmatprep.subr.bf16.mxu0 %v2643_v16  ;;  %2139 = vmatprep.subr.bf16.mxu1 %v2643_v16  ;;  %v1738_v46 = vmul.f32 %v2609_v33, %v3412_v15 }
 0x6db   :  { %v1755_v43 = vpack.c.bf16 %v1740_v6, %v1738_v46 }
 0x6dc   :  { %v1324_v31 = vpop.xlane.xlu1 %1323  ;;  %v1716_v7 = vpop.xlane.xlu0 %1715 }
 0x6df   :  { %v2611_v10 = vpop.eup %2610 }
 0x6e0   :  { %2176 = vmatpush3.bf16.xpose.msra.mxu0 %v1755_v43  ;;  %v1320_v14 = vpop.xlane.xlu1 %1319  ;;  %v1354_v15 = vmul.f32 %v2611_v10, %v3438_v27 }
 0x6e1   :  { %2612 = vrcp.f32 %v1320_v14  ;;  %2177 = vmatprep.subr.bf16.mxu0 %v2643_v16 }
 0x6e2   :  { %2614 = vrcp.f32 %v1324_v31 }
 0x6e3   :  { %2616 = vrcp.f32 %v1326_v55 }
 0x6e4   :  { %v1714_v59 = vpop.xlane.xlu1 %1713  ;;  %2618 = vrcp.f32 %v1712_v9  ;;  %v118_v17 = vpop.permute.xlu0 %117 }
 0x6e5   :  { %v217_v20 = vadd.f32 %v2778_v56, %v118_v17  ;;  %v1800_v56 = vld [vmem:[%s3559_s3 + $0x10] sm:$0xff] }
 0x6e6   :  { %v1803_v58 = vpack.c.bf16 %v1801_v0, %v1800_v56 }
 0x6e7   :  { %v1749_v63 = vpack.c.bf16 %v217_v20, %v217_v20 }
 0x6e8   :  { %v1710_v36 = vpop.xlane.xlu1 %1709  ;;  %v1823_v8 = vpop.permute.xlu0 %1822 }
 0x6e9   :  { %2620 = vrcp.f32 %v1710_v36 }
 0x6ea   :  { %2622 = vrcp.f32 %v1714_v59 }
 0x6eb   :  { %v2613_v34 = vpop.eup %2612  ;;  %2624 = vrcp.f32 %v1716_v7 }
 0x6ec   :  { %v1352_v13 = vmul.f32 %v2613_v34, %v3451_v53  ;;  %v2615_v51 = vpop.eup %2614  ;;  %v113_v38 = vpop.permute.xlu1 %112 }
 0x6ed   :  { %v2617_v44 = vpop.eup %2616  ;;  %v1356_v4 = vmul.f32 %v2615_v51, %v3447_v57  ;;  %v214_v50 = vadd.f32 %v2774_v54, %v113_v38  ;;  %v1798_v54 = vld [vmem:[%s3559_s3] sm:$0xff] }
 0x6ee   :  { %v1366_v11 = vpack.c.bf16 %v1354_v15, %v1352_v13  ;;  %v2619_v60 = vpop.eup %2618  ;;  %v1358_v42 = vmul.f32 %v2617_v44, %v3434_v24 }
 0x6ef   :  { %v1744_v53 = vmul.f32 %v2619_v60, %v3442_v32 }
 0x6f0   :  { %2140 = vmatpush3.bf16.xpose.msra.mxu1 %v1366_v11  ;;  %v1367_v27 = vpack.c.bf16 %v1358_v42, %v1356_v4  ;;  %v1813_v22 = vpop.permute.xlu1 %1812 }
 0x6f1   :  { %2141 = vmatprep.subr.bf16.mxu1 %v2643_v16 }
 0x6f3   :  { %v2621_v23 = vpop.eup %2620 }
 0x6f4   :  { %v1742_v30 = vmul.f32 %v2621_v23, %v3457_v40  ;;  %v2623_v3 = vpop.eup %2622  ;;  %v1359_v40 = vpack.c.bf16 %v214_v50, %v214_v50  ;;  %v1818_v37 = vpop.permute.xlu1 %1817 }
 0x6f5   :  { %v2625_v25 = vpop.eup %2624  ;;  %v1746_v57 = vmul.f32 %v2623_v3, %v3454_v48 }
 0x6f6   :  { %v1756_v29 = vpack.c.bf16 %v1744_v53, %v1742_v30  ;;  %v1748_v24 = vmul.f32 %v2625_v25, %v3445_v28 }
 0x6f8   :  { %2142 = vmatpush3.bf16.xpose.msra.mxu1 %v1367_v27  ;;  %2178 = vmatpush3.bf16.xpose.msra.mxu0 %v1756_v29  ;;  %v1757_v32 = vpack.c.bf16 %v1748_v24, %v1746_v57  ;;  %v1828_v39 = vpop.permute.xlu1 %1827 }
 0x6f9   :  { %2185 = vmatprep.subr.bf16.mxu1 %v3171_v5  ;;  %2179 = vmatprep.subr.bf16.mxu0 %v2643_v16  ;;  %v1799_v16 = vld [vmem:[%s3559_s3 + $0x8] sm:$0xff] }
 0x6fa   :  { %v1802_v28 = vpack.c.bf16 %v1799_v16, %v1798_v54 }
 0x6ff   :  { %2144 = vmatmul.mubr.bf16.vlgmr.msra.gmra.mrb[40].mxu1 %v1359_v40 }
 0x700   :  { %2180 = vmatpush3.bf16.xpose.msra.mxu0 %v1757_v32  ;;  %2186 = vmatpush3.bf16.msra.mxu1 %v3171_v5 }
 0x701   :  { %2189 = vmatprep.mubr.msk.bf16.mxu1 %vm120_vm0, %v1802_v28 }
 0x707   :  { %2182 = vmatmul.mubr.bf16.vlgmr.msra.gmra.mrb[44].mxu0 %v1749_v63 }
 0x7d2   :  { %v1402_v48 = vpop.f32.mrb[40].mxu1 }
 0x7d3   :  { %v2145_v41 = vpop.f32.mrb[41].mxu1 }
 0x7d4   :  { %v1405_v52 = vpop.f32.mrb[42].mxu1 }
 0x7d5   :  { %v2146_v19 = vpop.f32.mrb[43].mxu1 }
 0x7da   :  { %v1792_v5 = vpop.f32.mrb[44].mxu0 }
 0x7db   :  { %v1805_v62 = vpack.c.bf16 %v1792_v5, %v1402_v48  ;;  %v2183_v35 = vpop.f32.mrb[45].mxu0 }
 0x7dc   :  { %v1795_v26 = vpop.f32.mrb[46].mxu0 }
 0x7dd   :  { %v2184_v2 = vpop.f32.mrb[47].mxu0  ;;  %2187 = vmatprep.subr.bf16.mxu1 %v1805_v62 }
 0x7de   :  { %2188 = vmatpush3.bf16.msra.mxu1 %v1805_v62 }
 0x7e1   :  { %2190 = vmatmul.mubr.msk.bf16.vlgmr.msra.gmra.mrb[44].mxu1 %vm120_vm0, %v1803_v58 }
 0x8b4   :  { %v2191_v47 = vpop.f32.mrb[44].mxu1 }
 0x8b5   :  { %v1879_v21 = vadd.f32 %v2191_v47, %v1823_v8  ;;  %v1870_v49 = vpop.f32.mrb[45].mxu1 }
 0x8b6   :  { %v1871_v12 = vadd.f32 %v1870_v49, %v1813_v22  ;;  %v2192_v55 = vpop.f32.mrb[46].mxu1 }
 0x8b7   :  { %1887 = vst [vmem:[%s3560_s6 + $0x10] sm:$0xff] %v1879_v21  ;;  %v1882_v45 = vadd.f32 %v2192_v55, %v1828_v39  ;;  %v1873_v1 = vpop.f32.mrb[47].mxu1 }
 0x8b8   :  { %1885 = vst [vmem:[%s3560_s6] sm:$0xff] %v1871_v12  ;;  %v1874_v61 = vadd.f32 %v1873_v1, %v1818_v37 }
 0x8b9   :  { %1888 = vst [vmem:[%s3560_s6 + $0x18] sm:$0xff] %v1882_v45 }
 0x8ba   :  { %1886 = vst [vmem:[%s3560_s6 + $0x8] sm:$0xff] %v1874_v61 }

</bundles_post_ra>
